<compile_context>
chip_gen: v7x
topology: tpu7x:2x2x1
jax: 0.10.0
libtpu: 0.0.40
codegen_flags: <defaults>
</compile_context>

<pallas_src>
import functools

import jax
import jax.numpy as jnp
from jax.experimental import pallas as pl
from jax.experimental.pallas import tpu as pltpu

# adj_to_attn_mask: 0 where connected, -inf where not.  We use a large finite
# negative so padded / fully-masked query rows stay finite (same constant is
# used in the pure-JAX reference, so results match exactly).
_MASK_NEG = -1e30


def _round_up(x, m):
    return pl.cdiv(x, m) * m


# --------------------------------------------------------------------------
# Pallas kernels
# --------------------------------------------------------------------------


def _rowwise_matmul_kernel(x_ref, w_ref, o_ref):
    o_ref[...] = jnp.dot(
        x_ref[...], w_ref[...], preferred_element_type=jnp.float32
    ).astype(o_ref.dtype)


def _equi_attn_kernel(msg_ref, adj_ref, proj_ref, w_attn_ref, out_ref):
    # msg_ref : (1, tq, N_kv, d)   messages block
    # adj_ref : (1, tq, N_kv)      adjacency block
    # proj_ref: (1, 3, N_kv, d)    coord_proj(v_equi) for this batch (resident)
    # w_attn  : (d, d)             attn_proj weight, (in, out) layout (resident)
    # out_ref : (1, 3, tq, d)      lane-dense output block
    m = msg_ref[0].astype(jnp.float32)                        # (tq, N_kv, d)
    adj = adj_ref[0]                                          # (tq, N_kv)

    mask = jnp.where(adj != 0, 0.0, _MASK_NEG).astype(jnp.float32)
    s = m + mask[:, :, None]                                  # (tq, N_kv, d)

    # numerically-stable softmax over the kv axis (axis=1)
    s_max = jnp.max(s, axis=1, keepdims=True)                 # (tq, 1, d)
    p = jnp.exp(s - s_max)                                    # (tq, N_kv, d)
    denom = jnp.sum(p, axis=1, keepdims=True)                 # (tq, 1, d)
    a = p / denom                                             # (tq, N_kv, d)

    # per-channel attention magnitude: sqrt(sum_kv a^2)
    w = jnp.sqrt(jnp.sum(a * a, axis=1))                      # (tq, d)

    w_attn = w_attn_ref[...]                                  # hoisted, resident
    # The kv contraction has only 3 output columns -> do it as VPU
    # multiply+reduce per coordinate (MXU would be 3/256 utilized), then run
    # the d x d attn_proj on the MXU.
    for c in range(3):
        p_c = proj_ref[0, c]                                  # (N_kv, d)
        ao_c = jnp.sum(a * p_c[None, :, :], axis=1)           # (tq, d)
        o_c = jnp.dot(ao_c * w, w_attn,
                      preferred_element_type=jnp.float32)     # (tq, d)
        out_ref[0, c] = o_c.astype(out_ref.dtype)


# --------------------------------------------------------------------------
# pallas_call wrappers
# --------------------------------------------------------------------------


def rowwise_matmul(x, w, *, tm=256):
    """(M, K) @ (K, D) row-tiled on the MXU, remainder rows handled by padding."""
    M, K = x.shape
    D = w.shape[1]
    tm = min(_round_up(tm, 8), _round_up(M, 8))
    M_pad = _round_up(M, tm)
    if M_pad != M:
        x = jnp.pad(x, ((0, M_pad - M), (0, 0)))
    out = pl.pallas_call(
        _rowwise_matmul_kernel,
        out_shape=jax.ShapeDtypeStruct((M_pad, D), jnp.float32),
        grid=(M_pad // tm,),
        in_specs=[
            pl.BlockSpec((tm, K), lambda i: (i, 0)),
            pl.BlockSpec((K, D), lambda i: (0, 0)),
        ],
        out_specs=pl.BlockSpec((tm, D), lambda i: (i, 0)),
        compiler_params=pltpu.CompilerParams(dimension_semantics=("parallel",)),
    )(x, w)
    return out[:M] if M_pad != M else out


def equi_attention(v_equi, messages, adj_matrix, w_coord_t, w_attn_t, *, tq=None):
    """_EquiAttention.forward.

    v_equi:     (B, N_kv, 3, d_equi)
    messages:   (B, N_q, N_kv, d_equi)
    adj_matrix: (B, N_q, N_kv)
    w_coord_t / w_attn_t: (d_equi, d_equi), stored (in, out) == torch weight.T
    returns:    (B, N_q, 3, d_equi)
    """
    B, N_kv, _, d = v_equi.shape
    N_q = messages.shape[1]

    # ---- coord_proj: one big row-tiled MXU matmul over all (b, xyz, kv) rows ----
    v_t = jnp.transpose(v_equi, (0, 2, 1, 3)).reshape(B * 3 * N_kv, d)
    proj = rowwise_matmul(v_t.astype(jnp.float32), w_coord_t.astype(jnp.float32))
    proj = proj.reshape(B, 3, N_kv, d)

    # ---- fused mask + softmax + kv-contraction + weighting + attn_proj ----
    if tq is None:
        tq = 128                                   # large row tile by default
    tq = min(_round_up(tq, 8), _round_up(N_q, 8))
    N_q_pad = _round_up(N_q, tq)

    msg = messages.astype(jnp.float32)
    adj = adj_matrix.astype(jnp.float32)
    if N_q_pad != N_q:                             # remainder rows: pad, don't assert
        msg = jnp.pad(msg, ((0, 0), (0, N_q_pad - N_q), (0, 0), (0, 0)))
        adj = jnp.pad(adj, ((0, 0), (0, N_q_pad - N_q), (0, 0)))

    out = pl.pallas_call(
        _equi_attn_kernel,
        out_shape=jax.ShapeDtypeStruct((B, 3, N_q_pad, d), jnp.float32),
        grid=(B, N_q_pad // tq),
        in_specs=[
            pl.BlockSpec((1, tq, N_kv, d), lambda b, qi: (b, qi, 0, 0)),
            pl.BlockSpec((1, tq, N_kv), lambda b, qi: (b, qi, 0)),
            pl.BlockSpec((1, 3, N_kv, d), lambda b, qi: (b, 0, 0, 0)),
            pl.BlockSpec((d, d), lambda b, qi: (0, 0)),
        ],
        out_specs=pl.BlockSpec((1, 3, tq, d), lambda b, qi: (b, 0, qi, 0)),
        compiler_params=pltpu.CompilerParams(
            dimension_semantics=("parallel", "parallel")),
    )(msg, adj, proj, w_attn_t.astype(jnp.float32))

    out = out[:, :, :N_q, :]                       # drop padded q rows
    return jnp.transpose(out, (0, 2, 1, 3))        # (B, N_q, 3, d_equi)


# --------------------------------------------------------------------------
# Pure-JAX reference (mirrors the PyTorch module exactly)
# --------------------------------------------------------------------------


def ref_equi_attention(v_equi, messages, adj_matrix, w_coord_t, w_attn_t):
    hp = jax.lax.Precision.HIGHEST
    proj = jnp.einsum("bkce,ef->bkcf", v_equi, w_coord_t, precision=hp)
    mask = jnp.where(adj_matrix != 0, 0.0, _MASK_NEG)
    a = jax.nn.softmax(messages + mask[..., None], axis=2)
    attn_out = jnp.einsum("bqke,bkce->bqce", a, proj, precision=hp)
    w = jnp.sqrt(jnp.sum(a * a, axis=2))
    attn_out = attn_out * w[:, :, None, :]
    return jnp.einsum("bqce,ef->bqcf", attn_out, w_attn_t, precision=hp)


# --------------------------------------------------------------------------
# Main
# --------------------------------------------------------------------------

if __name__ == "__main__":
    B, N_q, N_kv, d_equi = 2, 12, 16, 128

    key = jax.random.PRNGKey(0)
    k1, k2, k3, k4, k5 = jax.random.split(key, 5)

    v_equi = jax.random.normal(k1, (B, N_kv, 3, d_equi), dtype=jnp.float32)
    messages = jax.random.normal(k2, (B, N_q, N_kv, d_equi), dtype=jnp.float32)
    adj_matrix = (jax.random.uniform(k3, (B, N_q, N_kv)) < 0.5).astype(jnp.float32)
    adj_matrix = adj_matrix.at[:, :, 0].set(1.0)   # every query attends to >= 1 key

    scale = d_equi ** -0.5
    w_coord_t = scale * jax.random.normal(k4, (d_equi, d_equi), dtype=jnp.float32)
    w_attn_t = scale * jax.random.normal(k5, (d_equi, d_equi), dtype=jnp.float32)

    # default (large-tile) path: single q tile per batch, exercises q padding 12 -> 16
    fwd_default = jax.jit(equi_attention)
    out = fwd_default(v_equi, messages, adj_matrix, w_coord_t, w_attn_t)
    jax.block_until_ready(out)

    # small-tile path: tq=8 -> multi-tile q grid + padding, proves index_maps
    fwd_tiled = jax.jit(functools.partial(equi_attention, tq=8))
    out_tiled = fwd_tiled(v_equi, messages, adj_matrix, w_coord_t, w_attn_t)
    jax.block_until_ready(out_tiled)

    ref = ref_equi_attention(v_equi, messages, adj_matrix, w_coord_t, w_attn_t)
    assert out.shape == (B, N_q, 3, d_equi)
    assert out_tiled.shape == (B, N_q, 3, d_equi)
    err0 = float(jnp.max(jnp.abs(out - ref)))
    err1 = float(jnp.max(jnp.abs(out_tiled - ref)))
    assert jnp.allclose(out, ref, atol=1e-3, rtol=1e-3), f"max abs err {err0}"
    assert jnp.allclose(out_tiled, ref, atol=1e-3, rtol=1e-3), f"max abs err {err1}"

    print("KERNEL_OK")
</pallas_src>

<mosaic_0001>
module attributes {stable_mosaic.version = 11 : i64} {
  func.func @_rowwise_matmul_kernel(%arg0: i32, %arg1: memref<96x128xf32, #tpu.memory_space<vmem>>, %arg2: memref<128x128xf32, #tpu.memory_space<vmem>>, %arg3: memref<96x128xf32, #tpu.memory_space<vmem>>) attributes {dimension_semantics = [#tpu.dimension_semantics<parallel>], iteration_bounds = array<i64: 1>, scalar_prefetch = 0 : i64, scratch_operands = 0 : i64, tpu.core_type = #tpu.core_type<tc>, window_params = [{transform_indices = @transform_0, window_bounds = array<i64: 96, 128>}, {pipeline_mode = #tpu.pipeline_mode<synchronous>, transform_indices = @transform_1, window_bounds = array<i64: 128, 128>}, {transform_indices = @transform_2, window_bounds = array<i64: 96, 128>}]} {
    %c0 = arith.constant 0 : index
    %c0_0 = arith.constant 0 : index
    %0 = vector.load %arg1[%c0, %c0_0] : memref<96x128xf32, #tpu.memory_space<vmem>>, vector<96x128xf32>
    %c0_1 = arith.constant 0 : index
    %c0_2 = arith.constant 0 : index
    %1 = vector.load %arg2[%c0_1, %c0_2] : memref<128x128xf32, #tpu.memory_space<vmem>>, vector<128x128xf32>
    %cst = arith.constant dense<0.000000e+00> : vector<96x128xf32>
    %2 = tpu.matmul %0, %1, %cst {dimension_numbers = #tpu.dot_dimension_numbers<[1], [0], [0], [1], [0, 0, 1, 1], [], []>} : vector<96x128xf32>, vector<128x128xf32>, vector<96x128xf32> -> vector<96x128xf32>
    %c0_3 = arith.constant 0 : index
    %c0_4 = arith.constant 0 : index
    %3 = vector.load %arg3[%c0_3, %c0_4] : memref<96x128xf32, #tpu.memory_space<vmem>>, vector<96x128xf32>
    tpu.vector_store %arg3[%c0_3, %c0_4], %2 {strides = array<i32>} : memref<96x128xf32, #tpu.memory_space<vmem>>, vector<96x128xf32>,
    return
  }
  func.func @transform_0(%arg0: i32) -> (i32, i32) {
    %c0_i32 = arith.constant 0 : i32
    %c0_i32_0 = arith.constant 0 : i32
    return %arg0, %c0_i32 : i32, i32
  }
  func.func @transform_1(%arg0: i32) -> (i32, i32) {
    %c0_i32 = arith.constant 0 : i32
    %c0_i32_0 = arith.constant 0 : i32
    %c0_i32_1 = arith.constant 0 : i32
    return %c0_i32, %c0_i32_0 : i32, i32
  }
  func.func @transform_2(%arg0: i32) -> (i32, i32) {
    %c0_i32 = arith.constant 0 : i32
    %c0_i32_0 = arith.constant 0 : i32
    return %arg0, %c0_i32 : i32, i32
  }
}

module attributes {stable_mosaic.version = 11 : i64} {
  func.func @_equi_attn_kernel(%arg0: i32, %arg1: i32, %arg2: memref<1x16x16x128xf32, #tpu.memory_space<vmem>>, %arg3: memref<1x16x16xf32, #tpu.memory_space<vmem>>, %arg4: memref<1x3x16x128xf32, #tpu.memory_space<vmem>>, %arg5: memref<128x128xf32, #tpu.memory_space<vmem>>, %arg6: memref<1x3x16x128xf32, #tpu.memory_space<vmem>>) attributes {dimension_semantics = [#tpu.dimension_semantics<parallel>, #tpu.dimension_semantics<parallel>], iteration_bounds = array<i64: 2, 1>, scalar_prefetch = 0 : i64, scratch_operands = 0 : i64, tpu.core_type = #tpu.core_type<tc>, window_params = [{transform_indices = @transform_0, window_bounds = array<i64: 1, 16, 16, 128>}, {transform_indices = @transform_1, window_bounds = array<i64: 1, 16, 16>}, {transform_indices = @transform_2, window_bounds = array<i64: 1, 3, 16, 128>}, {pipeline_mode = #tpu.pipeline_mode<synchronous>, transform_indices = @transform_3, window_bounds = array<i64: 128, 128>}, {transform_indices = @transform_4, window_bounds = array<i64: 1, 3, 16, 128>}]} {
    %c0 = arith.constant 0 : index
    %c0_0 = arith.constant 0 : index
    %c0_1 = arith.constant 0 : index
    %c0_2 = arith.constant 0 : index
    %0 = vector.load %arg2[%c0, %c0_0, %c0_1, %c0_2] : memref<1x16x16x128xf32, #tpu.memory_space<vmem>>, vector<1x16x16x128xf32>
    %1 = vector.shape_cast %0 : vector<1x16x16x128xf32> to vector<16x16x128xf32>
    %c0_3 = arith.constant 0 : index
    %c0_4 = arith.constant 0 : index
    %c0_5 = arith.constant 0 : index
    %2 = vector.load %arg3[%c0_3, %c0_4, %c0_5] : memref<1x16x16xf32, #tpu.memory_space<vmem>>, vector<1x16x16xf32>
    %3 = vector.shape_cast %2 : vector<1x16x16xf32> to vector<16x16xf32>
    %cst = arith.constant 0.000000e+00 : f32
    %4 = vector.broadcast %cst : f32 to vector<16x16xf32>
    %5 = arith.cmpf one, %3, %4 : vector<16x16xf32>
    %cst_6 = arith.constant 0.000000e+00 : f32
    %cst_7 = arith.constant -1.000000e+30 : f32
    %6 = vector.broadcast %cst_6 : f32 to vector<16x16xf32>
    %7 = vector.broadcast %cst_7 : f32 to vector<16x16xf32>
    %8 = arith.select %5, %6, %7 : vector<16x16xi1>, vector<16x16xf32>
    %9 = vector.shape_cast %8 : vector<16x16xf32> to vector<16x16x1xf32>
    %10 = vector.broadcast %9 : vector<16x16x1xf32> to vector<16x16x128xf32>
    %11 = arith.addf %1, %10 : vector<16x16x128xf32>
    %cst_8 = arith.constant dense<0xFF800000> : vector<16x128xf32>
    %12 = vector.multi_reduction <maximumf>, %11, %cst_8 [1] : vector<16x16x128xf32> to vector<16x128xf32>
    %13 = vector.shape_cast %12 : vector<16x128xf32> to vector<16x1x128xf32>
    %14 = vector.broadcast %13 : vector<16x1x128xf32> to vector<16x16x128xf32>
    %15 = arith.subf %11, %14 : vector<16x16x128xf32>
    %16 = math.exp %15 : vector<16x16x128xf32>
    %cst_9 = arith.constant dense<0.000000e+00> : vector<16x128xf32>
    %17 = vector.multi_reduction <add>, %16, %cst_9 [1] : vector<16x16x128xf32> to vector<16x128xf32>
    %18 = vector.shape_cast %17 : vector<16x128xf32> to vector<16x1x128xf32>
    %19 = vector.broadcast %18 : vector<16x1x128xf32> to vector<16x16x128xf32>
    %20 = arith.divf %16, %19 : vector<16x16x128xf32>
    %21 = arith.mulf %20, %20 : vector<16x16x128xf32>
    %cst_10 = arith.constant dense<0.000000e+00> : vector<16x128xf32>
    %22 = vector.multi_reduction <add>, %21, %cst_10 [1] : vector<16x16x128xf32> to vector<16x128xf32>
    %23 = math.sqrt %22 : vector<16x128xf32>
    %c0_11 = arith.constant 0 : index
    %c0_12 = arith.constant 0 : index
    %24 = vector.load %arg5[%c0_11, %c0_12] : memref<128x128xf32, #tpu.memory_space<vmem>>, vector<128x128xf32>
    %c0_13 = arith.constant 0 : index
    %c0_14 = arith.constant 0 : index
    %c0_15 = arith.constant 0 : index
    %c0_16 = arith.constant 0 : index
    %25 = vector.load %arg4[%c0_13, %c0_14, %c0_15, %c0_16] : memref<1x3x16x128xf32, #tpu.memory_space<vmem>>, vector<1x1x16x128xf32>
    %26 = vector.shape_cast %25 : vector<1x1x16x128xf32> to vector<16x128xf32>
    %27 = vector.shape_cast %26 : vector<16x128xf32> to vector<1x16x128xf32>
    %28 = vector.broadcast %27 : vector<1x16x128xf32> to vector<16x16x128xf32>
    %29 = arith.mulf %20, %28 : vector<16x16x128xf32>
    %cst_17 = arith.constant dense<0.000000e+00> : vector<16x128xf32>
    %30 = vector.multi_reduction <add>, %29, %cst_17 [1] : vector<16x16x128xf32> to vector<16x128xf32>
    %31 = arith.mulf %30, %23 : vector<16x128xf32>
    %cst_18 = arith.constant dense<0.000000e+00> : vector<16x128xf32>
    %32 = tpu.matmul %31, %24, %cst_18 {dimension_numbers = #tpu.dot_dimension_numbers<[1], [0], [0], [1], [0, 0, 1, 1], [], []>} : vector<16x128xf32>, vector<128x128xf32>, vector<16x128xf32> -> vector<16x128xf32>
    %c0_19 = arith.constant 0 : index
    %c0_20 = arith.constant 0 : index
    %c0_21 = arith.constant 0 : index
    %c0_22 = arith.constant 0 : index
    %33 = vector.load %arg6[%c0_19, %c0_20, %c0_21, %c0_22] : memref<1x3x16x128xf32, #tpu.memory_space<vmem>>, vector<1x1x16x128xf32>
    %34 = vector.shape_cast %33 : vector<1x1x16x128xf32> to vector<16x128xf32>
    %35 = vector.shape_cast %32 : vector<16x128xf32> to vector<1x1x16x128xf32>
    tpu.vector_store %arg6[%c0_19, %c0_20, %c0_21, %c0_22], %35 {strides = array<i32>} : memref<1x3x16x128xf32, #tpu.memory_space<vmem>>, vector<1x1x16x128xf32>,
    %c0_23 = arith.constant 0 : index
    %c1 = arith.constant 1 : index
    %c0_24 = arith.constant 0 : index
    %c0_25 = arith.constant 0 : index
    %36 = vector.load %arg4[%c0_23, %c1, %c0_24, %c0_25] : memref<1x3x16x128xf32, #tpu.memory_space<vmem>>, vector<1x1x16x128xf32>
    %37 = vector.shape_cast %36 : vector<1x1x16x128xf32> to vector<16x128xf32>
    %38 = vector.shape_cast %37 : vector<16x128xf32> to vector<1x16x128xf32>
    %39 = vector.broadcast %38 : vector<1x16x128xf32> to vector<16x16x128xf32>
    %40 = arith.mulf %20, %39 : vector<16x16x128xf32>
    %cst_26 = arith.constant dense<0.000000e+00> : vector<16x128xf32>
    %41 = vector.multi_reduction <add>, %40, %cst_26 [1] : vector<16x16x128xf32> to vector<16x128xf32>
    %42 = arith.mulf %41, %23 : vector<16x128xf32>
    %cst_27 = arith.constant dense<0.000000e+00> : vector<16x128xf32>
    %43 = tpu.matmul %42, %24, %cst_27 {dimension_numbers = #tpu.dot_dimension_numbers<[1], [0], [0], [1], [0, 0, 1, 1], [], []>} : vector<16x128xf32>, vector<128x128xf32>, vector<16x128xf32> -> vector<16x128xf32>
    %c0_28 = arith.constant 0 : index
    %c1_29 = arith.constant 1 : index
    %c0_30 = arith.constant 0 : index
    %c0_31 = arith.constant 0 : index
    %44 = vector.load %arg6[%c0_28, %c1_29, %c0_30, %c0_31] : memref<1x3x16x128xf32, #tpu.memory_space<vmem>>, vector<1x1x16x128xf32>
    %45 = vector.shape_cast %44 : vector<1x1x16x128xf32> to vector<16x128xf32>
    %46 = vector.shape_cast %43 : vector<16x128xf32> to vector<1x1x16x128xf32>
    tpu.vector_store %arg6[%c0_28, %c1_29, %c0_30, %c0_31], %46 {strides = array<i32>} : memref<1x3x16x128xf32, #tpu.memory_space<vmem>>, vector<1x1x16x128xf32>,
    %c0_32 = arith.constant 0 : index
    %c2 = arith.constant 2 : index
    %c0_33 = arith.constant 0 : index
    %c0_34 = arith.constant 0 : index
    %47 = vector.load %arg4[%c0_32, %c2, %c0_33, %c0_34] : memref<1x3x16x128xf32, #tpu.memory_space<vmem>>, vector<1x1x16x128xf32>
    %48 = vector.shape_cast %47 : vector<1x1x16x128xf32> to vector<16x128xf32>
    %49 = vector.shape_cast %48 : vector<16x128xf32> to vector<1x16x128xf32>
    %50 = vector.broadcast %49 : vector<1x16x128xf32> to vector<16x16x128xf32>
    %51 = arith.mulf %20, %50 : vector<16x16x128xf32>
    %cst_35 = arith.constant dense<0.000000e+00> : vector<16x128xf32>
    %52 = vector.multi_reduction <add>, %51, %cst_35 [1] : vector<16x16x128xf32> to vector<16x128xf32>
    %53 = arith.mulf %52, %23 : vector<16x128xf32>
    %cst_36 = arith.constant dense<0.000000e+00> : vector<16x128xf32>
    %54 = tpu.matmul %53, %24, %cst_36 {dimension_numbers = #tpu.dot_dimension_numbers<[1], [0], [0], [1], [0, 0, 1, 1], [], []>} : vector<16x128xf32>, vector<128x128xf32>, vector<16x128xf32> -> vector<16x128xf32>
    %c0_37 = arith.constant 0 : index
    %c2_38 = arith.constant 2 : index
    %c0_39 = arith.constant 0 : index
    %c0_40 = arith.constant 0 : index
    %55 = vector.load %arg6[%c0_37, %c2_38, %c0_39, %c0_40] : memref<1x3x16x128xf32, #tpu.memory_space<vmem>>, vector<1x1x16x128xf32>
    %56 = vector.shape_cast %55 : vector<1x1x16x128xf32> to vector<16x128xf32>
    %57 = vector.shape_cast %54 : vector<16x128xf32> to vector<1x1x16x128xf32>
    tpu.vector_store %arg6[%c0_37, %c2_38, %c0_39, %c0_40], %57 {strides = array<i32>} : memref<1x3x16x128xf32, #tpu.memory_space<vmem>>, vector<1x1x16x128xf32>,
    return
  }
  func.func @transform_0(%arg0: i32, %arg1: i32) -> (i32, i32, i32, i32) {
    %c0_i32 = arith.constant 0 : i32
    %c0_i32_0 = arith.constant 0 : i32
    %c0_i32_1 = arith.constant 0 : i32
    return %arg0, %arg1, %c0_i32, %c0_i32_0 : i32, i32, i32, i32
  }
  func.func @transform_1(%arg0: i32, %arg1: i32) -> (i32, i32, i32) {
    %c0_i32 = arith.constant 0 : i32
    %c0_i32_0 = arith.constant 0 : i32
    return %arg0, %arg1, %c0_i32 : i32, i32, i32
  }
  func.func @transform_2(%arg0: i32, %arg1: i32) -> (i32, i32, i32, i32) {
    %c0_i32 = arith.constant 0 : i32
    %c0_i32_0 = arith.constant 0 : i32
    %c0_i32_1 = arith.constant 0 : i32
    %c0_i32_2 = arith.constant 0 : i32
    return %arg0, %c0_i32, %c0_i32_0, %c0_i32_1 : i32, i32, i32, i32
  }
  func.func @transform_3(%arg0: i32, %arg1: i32) -> (i32, i32) {
    %c0_i32 = arith.constant 0 : i32
    %c0_i32_0 = arith.constant 0 : i32
    %c0_i32_1 = arith.constant 0 : i32
    return %c0_i32, %c0_i32_0 : i32, i32
  }
  func.func @transform_4(%arg0: i32, %arg1: i32) -> (i32, i32, i32, i32) {
    %c0_i32 = arith.constant 0 : i32
    %c0_i32_0 = arith.constant 0 : i32
    %c0_i32_1 = arith.constant 0 : i32
    return %arg0, %c0_i32, %arg1, %c0_i32_0 : i32, i32, i32, i32
  }
}

</mosaic_0001>

<bundles_post_ra>
// kernel: equi_attention.2
= control target key start
LH: loop header
LB: loop body
LE: loop exit
PB: predicated region body
PF: predicated region fallthrough
CT: control target
= control target key end

     0   :  { %7 = vsyncpa [#allocation3], 0  ;;  %s467_s0 = inlined_call_operand.hbm [shape: f32[96,128], index: 0, kind: input, shape index: {}]   ;;  %s468_s1 = inlined_call_operand.hbm [shape: f32[128,128], index: 1, kind: input, shape index: {}]   ;;  %s469_s2 = inlined_call_operand.vmem [shape: f32[96,128], index: 2, kind: output, shape index: {}]  }
   0x1   :  { %8 = vsyncpa [#allocation5], 0  ;;  %s388_s9 = smov [#allocation2]   ;;  %s340_s13 = scalar_lea.hbm %s467_s0, 1536 }
   0x2   :  { %s14_s10 = sshll.u32 %s388_s9, 4  ;;  %p341_p0 = scmp.ne.s32.totalorder %s467_s0, %s340_s13  ;;  %s15_s10 = int_to_ptr.vmem [resolvable:$true] %s14_s10 }
   0x3   :  { %p344_p1 = scmp.lt.u32.totalorder %s340_s13, %s467_s0 }
   0x5   :  { %p346_p2 = pnand %p344_p1, %p341_p0 }
   0x7   :  { %349 = shalt.err (!%p346_p2)
}
   0x8   :  { %s350_s18 = scalar_lea.vmem %s15_s10, 1536  ;;  %p355_p4 = scmp.lt.s32.totalorder %s15_s10, %s15_s10 }
   0x9   :  { %p351_p3 = scmp.ne.s32.totalorder %s15_s10, %s350_s18  ;;  %p356_p5 = scmp.lt.s32.totalorder %s350_s18, %s350_s18 }
   0xb   :  { %p357_p6 = por %p356_p5, %p355_p4 }
   0xd   :  { %p358_p7 = pnand %p357_p6, %p351_p3 }
   0xf   :  { %361 = shalt.err (!%p358_p7)
}
  0x10   :  { %s389_s19 = smov 128   ;;  %s390_s20 = smov 8  }
  0x11   :  { %20 = dma.hbm_to_vmem [thread:$0]  %s467_s0, 1536, %s15_s10, [#allocation3], %s389_s19, %s389_s19, %s390_s20  }
  0x12   :  { %s391_s23 = smov [#allocation4]   ;;  %s362_s27 = scalar_lea.hbm %s468_s1, 2048 }
  0x13   :  { %s26_s24 = sshll.u32 %s391_s23, 4  ;;  %p363_p8 = scmp.ne.s32.totalorder %s468_s1, %s362_s27  ;;  %s27_s24 = int_to_ptr.vmem [resolvable:$true] %s26_s24 }
  0x14   :  { %p366_p9 = scmp.lt.u32.totalorder %s362_s27, %s468_s1 }
  0x16   :  { %p368_p10 = pnand %p366_p9, %p363_p8 }
  0x18   :  { %371 = shalt.err (!%p368_p10)
}
  0x19   :  { %s372_s4 = scalar_lea.vmem %s27_s24, 2048  ;;  %p377_p12 = scmp.lt.s32.totalorder %s27_s24, %s27_s24 }
  0x1a   :  { %p373_p11 = scmp.ne.s32.totalorder %s27_s24, %s372_s4  ;;  %p378_p13 = scmp.lt.s32.totalorder %s372_s4, %s372_s4 }
  0x1c   :  { %p379_p0 = por %p378_p13, %p377_p12 }
  0x1e   :  { %p380_p1 = pnand %p379_p0, %p373_p11 }
  0x20   :  { %383 = shalt.err (!%p380_p1)
}
  0x21   :  { %32 = dma.hbm_to_vmem [thread:$0]  %s468_s1, 2048, %s27_s24, [#allocation5], %s389_s19, %s389_s19, %s390_s20  }
  0x22   :  { %384 = dma.done.wait [#allocation3], 1536  }
  0x23   :  { %385 = vsyncadd [#allocation3], 4294965760 }
  0x24   :  { %386 = dma.done.wait [#allocation5], 2048  }
  0x25   :  { %387 = vsyncadd [#allocation5], 4294965248  ;;  %v51_v0 = vld [vmem:[#allocation4] sm:$0xff]  ;;  %v52_v1 = vld [vmem:[#allocation4 + $0x8] sm:$0xff] }
  0x26   :  { %v53_v2 = vld [vmem:[#allocation4 + $0x10] sm:$0xff]  ;;  %v288_v3 = vpack.c.bf16 %v52_v1, %v51_v0  ;;  %v54_v4 = vld [vmem:[#allocation4 + $0x18] sm:$0xff]  ;;  %v55_v6 = vld [vmem:[#allocation4 + $0x20] sm:$0xff] }
  0x27   :  { %v292_v5 = vpack.c.bf16 %v54_v4, %v53_v2  ;;  %v56_v7 = vld [vmem:[#allocation4 + $0x28] sm:$0xff]  ;;  %v39_v9 = vld [vmem:[#allocation2] sm:$0xff]  ;;  %v45_v10 = vld [vmem:[#allocation2 + $0x30] sm:$0xff] }
  0x28   :  { %289 = vmatprep.subr.bf16.mxu0 %v288_v3  ;;  %320 = vmatprep.subr.bf16.mxu1 %v288_v3  ;;  %v296_v8 = vpack.c.bf16 %v56_v7, %v55_v6  ;;  %v57_v11 = vld [vmem:[#allocation4 + $0x30] sm:$0xff]  ;;  %v58_v12 = vld [vmem:[#allocation4 + $0x38] sm:$0xff]  ;;  %v59_v14 = vld [vmem:[#allocation4 + $0x40] sm:$0xff] }
  0x29   :  { %291 = vmatpush3.bf16.msra.mxu0 %v288_v3  ;;  %328 = vmatpush3.bf16.msra.mxu1 %v288_v3  ;;  %v300_v13 = vpack.c.bf16 %v58_v12, %v57_v11  ;;  %v60_v15 = vld [vmem:[#allocation4 + $0x48] sm:$0xff]  ;;  %v61_v17 = vld [vmem:[#allocation4 + $0x50] sm:$0xff]  ;;  %v62_v18 = vld [vmem:[#allocation4 + $0x58] sm:$0xff] }
  0x2a   :  { %293 = vmatprep.subr.bf16.mxu0 %v292_v5  ;;  %321 = vmatprep.subr.bf16.mxu1 %v292_v5  ;;  %v304_v16 = vpack.c.bf16 %v60_v15, %v59_v14  ;;  %v308_v19 = vpack.c.bf16 %v62_v18, %v61_v17  ;;  %v63_v20 = vld [vmem:[#allocation4 + $0x60] sm:$0xff]  ;;  %v64_v21 = vld [vmem:[#allocation4 + $0x68] sm:$0xff]  ;;  %v65_v23 = vld [vmem:[#allocation4 + $0x70] sm:$0xff] }
  0x2b   :  { %270 = vmatprep.mubr.f32.mxu0 %v39_v9  ;;  %279 = vmatprep.mubr.f32.mxu1 %v45_v10  ;;  %v312_v22 = vpack.c.bf16 %v64_v21, %v63_v20  ;;  %v66_v24 = vld [vmem:[#allocation4 + $0x78] sm:$0xff]  ;;  %v40_v26 = vld [vmem:[#allocation2 + $0x8] sm:$0xff]  ;;  %v41_v28 = vld [vmem:[#allocation2 + $0x10] sm:$0xff] }
  0x2c   :  { %v316_v25 = vpack.c.bf16 %v66_v24, %v65_v23  ;;  %v46_v27 = vld [vmem:[#allocation2 + $0x38] sm:$0xff]  ;;  %v47_v29 = vld [vmem:[#allocation2 + $0x40] sm:$0xff]  ;;  %v48_v31 = vld [vmem:[#allocation2 + $0x48] sm:$0xff] }
  0x2d   :  { %295 = vmatpush3.bf16.msra.mxu0 %v292_v5  ;;  %329 = vmatpush3.bf16.msra.mxu1 %v292_v5  ;;  %v42_v30 = vld [vmem:[#allocation2 + $0x18] sm:$0xff]  ;;  %v43_v32 = vld [vmem:[#allocation2 + $0x20] sm:$0xff]  ;;  %v49_v33 = vld [vmem:[#allocation2 + $0x50] sm:$0xff] }
  0x2e   :  { %297 = vmatprep.subr.bf16.mxu0 %v296_v8  ;;  %322 = vmatprep.subr.bf16.mxu1 %v296_v8  ;;  %v44_v34 = vld [vmem:[#allocation2 + $0x28] sm:$0xff]  ;;  %v50_v35 = vld [vmem:[#allocation2 + $0x58] sm:$0xff] }
  0x31   :  { %299 = vmatpush3.bf16.msra.mxu0 %v296_v8  ;;  %330 = vmatpush3.bf16.msra.mxu1 %v296_v8 }
  0x32   :  { %301 = vmatprep.subr.bf16.mxu0 %v300_v13  ;;  %323 = vmatprep.subr.bf16.mxu1 %v300_v13 }
  0x35   :  { %303 = vmatpush3.bf16.msra.mxu0 %v300_v13  ;;  %331 = vmatpush3.bf16.msra.mxu1 %v300_v13 }
  0x36   :  { %305 = vmatprep.subr.bf16.mxu0 %v304_v16  ;;  %324 = vmatprep.subr.bf16.mxu1 %v304_v16 }
  0x39   :  { %307 = vmatpush3.bf16.msra.mxu0 %v304_v16  ;;  %332 = vmatpush3.bf16.msra.mxu1 %v304_v16 }
  0x3a   :  { %309 = vmatprep.subr.bf16.mxu0 %v308_v19  ;;  %325 = vmatprep.subr.bf16.mxu1 %v308_v19 }
  0x3d   :  { %311 = vmatpush3.bf16.msra.mxu0 %v308_v19  ;;  %333 = vmatpush3.bf16.msra.mxu1 %v308_v19 }
  0x3e   :  { %313 = vmatprep.subr.bf16.mxu0 %v312_v22  ;;  %326 = vmatprep.subr.bf16.mxu1 %v312_v22 }
  0x41   :  { %315 = vmatpush3.bf16.msra.mxu0 %v312_v22  ;;  %334 = vmatpush3.bf16.msra.mxu1 %v312_v22 }
  0x42   :  { %317 = vmatprep.subr.bf16.mxu0 %v316_v25  ;;  %327 = vmatprep.subr.bf16.mxu1 %v316_v25 }
  0x45   :  { %319 = vmatpush3.bf16.msra.mxu0 %v316_v25  ;;  %335 = vmatpush3.bf16.msra.mxu1 %v316_v25 }
  0x48   :  { %271 = vmatmul.mubr.f32.vlgmr.msra.gmra.mrb[0].mxu0 %v40_v26  ;;  %280 = vmatmul.mubr.f32.vlgmr.msra.gmra.mrb[0].mxu1 %v46_v27 }
  0x49   :  { %273 = vmatprep.mubr.f32.mxu0 %v41_v28  ;;  %282 = vmatprep.mubr.f32.mxu1 %v47_v29 }
  0x4c   :  { %274 = vmatmul.mubr.f32.gmra.mrb[2].mxu0 %v42_v30  ;;  %283 = vmatmul.mubr.f32.gmra.mrb[2].mxu1 %v48_v31 }
  0x4d   :  { %276 = vmatprep.mubr.f32.mxu0 %v43_v32  ;;  %285 = vmatprep.mubr.f32.mxu1 %v49_v33 }
  0x50   :  { %277 = vmatmul.mubr.f32.gmra.mrb[4].mxu0 %v44_v34  ;;  %286 = vmatmul.mubr.f32.gmra.mrb[4].mxu1 %v50_v35 }
 0x11b   :  { %v272_v36 = vpop.f32.mrb[0].mxu0  ;;  %v281_v37 = vpop.f32.mrb[0].mxu1 }
 0x11c   :  { %193 = vst [vmem:[%s469_s2 + $0x8] sm:$0xff] %v272_v36  ;;  %199 = vst [vmem:[%s469_s2 + $0x38] sm:$0xff] %v281_v37  ;;  %v133_v38 = vpop.f32.mrb[1].mxu0  ;;  %v163_v39 = vpop.f32.mrb[1].mxu1 }
 0x11d   :  { %192 = vst [vmem:[%s469_s2] sm:$0xff] %v133_v38  ;;  %198 = vst [vmem:[%s469_s2 + $0x30] sm:$0xff] %v163_v39 }
 0x11f   :  { %v275_v40 = vpop.f32.mrb[2].mxu0  ;;  %v284_v41 = vpop.f32.mrb[2].mxu1 }
 0x120   :  { %195 = vst [vmem:[%s469_s2 + $0x18] sm:$0xff] %v275_v40  ;;  %201 = vst [vmem:[%s469_s2 + $0x48] sm:$0xff] %v284_v41  ;;  %v143_v42 = vpop.f32.mrb[3].mxu0  ;;  %v173_v43 = vpop.f32.mrb[3].mxu1 }
 0x121   :  { %194 = vst [vmem:[%s469_s2 + $0x10] sm:$0xff] %v143_v42  ;;  %200 = vst [vmem:[%s469_s2 + $0x40] sm:$0xff] %v173_v43 }
 0x123   :  { %v278_v44 = vpop.f32.mrb[4].mxu0  ;;  %v287_v45 = vpop.f32.mrb[4].mxu1 }
 0x124   :  { %197 = vst [vmem:[%s469_s2 + $0x28] sm:$0xff] %v278_v44  ;;  %203 = vst [vmem:[%s469_s2 + $0x58] sm:$0xff] %v287_v45  ;;  %v153_v46 = vpop.f32.mrb[5].mxu0  ;;  %v183_v47 = vpop.f32.mrb[5].mxu1 }
 0x125   :  { %196 = vst [vmem:[%s469_s2 + $0x20] sm:$0xff] %v153_v46  ;;  %202 = vst [vmem:[%s469_s2 + $0x50] sm:$0xff] %v183_v47 }
 0x126   :  { %208 = vsyncpa [#allocation3], 1 }
 0x127   :  { %209 = vsyncpa [#allocation5], 1 }

// kernel: equi_attention.3
= control target key start
LH: loop header
LB: loop body
LE: loop exit
PB: predicated region body
PF: predicated region fallthrough
CT: control target
= control target key end

     0   :  { %s2614_s15 = smov 0   ;;  %s2616_s16 = smov 0   ;;  %s3886_s0 = inlined_call_operand.vmem [shape: f32[2,16,16,128], index: 0, kind: input, shape index: {}]   ;;  %s3887_s1 = inlined_call_operand.vmem [shape: f32[2,16,16], index: 1, kind: input, shape index: {}]   ;;  %s3888_s2 = inlined_call_operand.vmem [shape: f32[2,3,16,128], index: 2, kind: input, shape index: {}]   ;;  %s3889_s3 = inlined_call_operand.vmem [shape: f32[128,128], index: 3, kind: input, shape index: {}]   ;;  %s3890_s4 = inlined_call_operand.vmem [shape: f32[2,3,16,128], index: 4, kind: output, shape index: {}]  }
   0x1   :  { %s2618_s17 = smov 0  }
   0x2 LB: > { %s26_s18 = sadd.s32 1, %s2582_s16  ;;  %p2130_p0 = scmp.ge.s32.totalorder %s2586_s17, 1  ;;  %s2586_s17 = sphi %s2618_s17, %s14_s17   ;;  %s2582_s16 = sphi %s2616_s16, %s4073_s16   ;;  %s2578_s15 = sphi %s2614_s15, %s4072_s15  }
   0x3   : > { %p28_p1 = scmp.ge.s32.totalorder %s26_s18, 2  ;;  %p211_p2 = scmp.lt.s32.totalorder %s2586_s17, 3 }
   0x5   : > { %s4075_s18 = smov (%p28_p1, %s26_s18), 0  ;;  %p212_p3 = pnand %p2130_p0, %p211_p2 }
   0x7   : > { %215 = sbr.rel (%p212_p3) target bundleno = 672 (0x2a0), region = 36 }
   0xe   : > { %p261_p4 = scmp.lt.s32.totalorder %s2578_s15, 1  ;;  %v334_v0 = vlaneseq  ;;  %v2588_v5 = vmov -1e+30  }
  0x10   : > { %s4077_s15 = smov (!%p261_p4, %s2578_s15), 1  ;;  %v2634_v1 = vshrl.u32 %v334_v0, 7 }
  0x11   : > { %s2148_s19 = sshll.u32 %s4077_s15, 4  ;;  %s2147_s23 = sshll.u32 %s4077_s15, 8 }
  0x12   : > { %s279_s22 = scalar_lea.vmem %s3887_s1, %s2148_s19  ;;  %v347_v2 = vsub.s32 1, %v2634_v1  ;;  %v336_v3 = vsub.s32 0, %v2634_v1  ;;  %v358_v10 = vsub.s32 2, %v2634_v1  ;;  %v369_v15 = vsub.s32 3, %v2634_v1  ;;  %s2652_s26 = scalar_lea.vmem %s3886_s0, %s2147_s23 }
  0x13   : > { %v328_v4 = vld [vmem:[%s279_s22] sm:$0xff]  ;;  %v329_v9 = vld [vmem:[%s279_s22 + $0x8] sm:$0xff]  ;;  %v380_v18 = vsub.s32 4, %v2634_v1  ;;  %v391_v21 = vsub.s32 5, %v2634_v1  ;;  %v402_v24 = vsub.s32 6, %v2634_v1  ;;  %v413_v27 = vsub.s32 7, %v2634_v1 }
  0x14   : > { %vm330_vm0 = vcmp.ne.f32.partialorder %v328_v4, 0.0  ;;  %vm331_vm1 = vcmp.ne.f32.partialorder %v329_v9, 0.0  ;;  %v298_v33 = vld [vmem:[%s2652_s26 + $0x10] sm:$0xff]  ;;  %v296_v34 = vld [vmem:[%s2652_s26] sm:$0xff]  ;;  %v299_v35 = vld [vmem:[%s2652_s26 + $0x18] sm:$0xff]  ;;  %s2404_s27 = smul.u32 48, %s4077_s15 }
  0x15   : > { %v332_v6 = vsel %vm330_vm0, 0.0, %v2588_v5  ;;  %v333_v12 = vsel %vm331_vm1, 0.0, %v2588_v5  ;;  %v297_v36 = vld [vmem:[%s2652_s26 + $0x8] sm:$0xff]  ;;  %v300_v44 = vld [vmem:[%s2652_s26 + $0x20] sm:$0xff]  ;;  %v315_v1 = vld [vmem:[%s2652_s26 + $0x98] sm:$0xff]  ;;  %vm1360_vm0 = vcmask 1041409  }
  0x16   : > { %v348_v7 = vrot.slane %v332_v6, %v347_v2  ;;  %v337_v8 = vrot.slane %v332_v6, %v336_v3  ;;  %v359_v11 = vrot.slane %v332_v6, %v358_v10  ;;  %v425_v13 = vrot.slane %v333_v12, %v336_v3  ;;  %v301_v43 = vld [vmem:[%s2652_s26 + $0x28] sm:$0xff]  ;;  %v312_v57 = vld [vmem:[%s2652_s26 + $0x80] sm:$0xff]  ;;  %v314_v5 = vld [vmem:[%s2652_s26 + $0x90] sm:$0xff]  ;;  %s2786_s30 = scalar_lea.vmem %s3888_s2, %s2404_s27  ;;  %s294_s22 = scalar_lea.vmem %s3890_s4, %s2404_s27 }
  0x17   : > { %v436_v14 = vrot.slane %v333_v12, %v347_v2  ;;  %v370_v16 = vrot.slane %v332_v6, %v369_v15  ;;  %v447_v17 = vrot.slane %v333_v12, %v358_v10  ;;  %v381_v19 = vrot.slane %v332_v6, %v380_v18  ;;  %v313_v53 = vld [vmem:[%s2652_s26 + $0x88] sm:$0xff] }
  0x18   : > { %350 = vbcast.lane.b32.xlu1 %v348_v7, 256  ;;  %339 = vbcast.lane.b32.xlu0 %v337_v8, 256  ;;  %v458_v20 = vrot.slane %v333_v12, %v369_v15  ;;  %v392_v22 = vrot.slane %v332_v6, %v391_v21  ;;  %v469_v23 = vrot.slane %v333_v12, %v380_v18  ;;  %v303_v18 = vld [vmem:[%s2652_s26 + $0x38] sm:$0xff]  ;;  %vm1362_vm1 = vcmask 1042434  }
  0x19   : > { %v403_v25 = vrot.slane %v332_v6, %v402_v24  ;;  %v480_v26 = vrot.slane %v333_v12, %v391_v21  ;;  %v414_v28 = vrot.slane %v332_v6, %v413_v27  ;;  %v491_v29 = vrot.slane %v333_v12, %v402_v24 }
  0x1a   : > { %v502_v30 = vrot.slane %v333_v12, %v413_v27 }
  0x1c   : > { %354 = vbcast.lane.b32.xlu1 %v348_v7, 264  ;;  %343 = vbcast.lane.b32.xlu0 %v337_v8, 264 }
  0x20   : > { %365 = vbcast.lane.b32.xlu1 %v359_v11, 264  ;;  %361 = vbcast.lane.b32.xlu0 %v359_v11, 256 }
  0x24   : > { %431 = vbcast.lane.b32.xlu1 %v425_v13, 264  ;;  %427 = vbcast.lane.b32.xlu0 %v425_v13, 256 }
  0x28   : > { %442 = vbcast.lane.b32.xlu1 %v436_v14, 264  ;;  %438 = vbcast.lane.b32.xlu0 %v436_v14, 256 }
  0x2c   : > { %376 = vbcast.lane.b32.xlu1 %v370_v16, 264  ;;  %372 = vbcast.lane.b32.xlu0 %v370_v16, 256 }
  0x30   : > { %453 = vbcast.lane.b32.xlu1 %v447_v17, 264  ;;  %449 = vbcast.lane.b32.xlu0 %v447_v17, 256 }
  0x34   : > { %387 = vbcast.lane.b32.xlu1 %v381_v19, 264  ;;  %383 = vbcast.lane.b32.xlu0 %v381_v19, 256 }
  0x38   : > { %464 = vbcast.lane.b32.xlu1 %v458_v20, 264  ;;  %460 = vbcast.lane.b32.xlu0 %v458_v20, 256 }
  0x3c   : > { %398 = vbcast.lane.b32.xlu1 %v392_v22, 264  ;;  %394 = vbcast.lane.b32.xlu0 %v392_v22, 256 }
  0x40   : > { %475 = vbcast.lane.b32.xlu1 %v469_v23, 264  ;;  %471 = vbcast.lane.b32.xlu0 %v469_v23, 256  ;;  %v302_v23 = vld [vmem:[%s2652_s26 + $0x30] sm:$0xff] }
  0x44   : > { %409 = vbcast.lane.b32.xlu1 %v403_v25, 264  ;;  %405 = vbcast.lane.b32.xlu0 %v403_v25, 256 }
  0x48   : > { %486 = vbcast.lane.b32.xlu1 %v480_v26, 264  ;;  %482 = vbcast.lane.b32.xlu0 %v480_v26, 256 }
  0x4c   : > { %420 = vbcast.lane.b32.xlu1 %v414_v28, 264  ;;  %416 = vbcast.lane.b32.xlu0 %v414_v28, 256 }
  0x50   : > { %497 = vbcast.lane.b32.xlu1 %v491_v29, 264  ;;  %493 = vbcast.lane.b32.xlu0 %v491_v29, 256 }
  0x54   : > { %508 = vbcast.lane.b32.xlu1 %v502_v30, 264  ;;  %504 = vbcast.lane.b32.xlu0 %v502_v30, 256 }
  0x8a   : > { %v351_v31 = vpop.permute.xlu1 %350  ;;  %v340_v32 = vpop.permute.xlu0 %339 }
  0x8b   : > { %v512_v39 = vadd.f32 %v351_v31, %v298_v33  ;;  %v510_v40 = vadd.f32 %v340_v32, %v296_v34  ;;  %v317_v32 = vld [vmem:[%s2652_s26 + $0xa8] sm:$0xff]  ;;  %v316_v33 = vld [vmem:[%s2652_s26 + $0xa0] sm:$0xff] }
  0x8e   : > { %v355_v37 = vpop.permute.xlu1 %354  ;;  %v344_v38 = vpop.permute.xlu0 %343 }
  0x8f   : > { %v513_v41 = vadd.f32 %v355_v37, %v299_v35  ;;  %v511_v42 = vadd.f32 %v344_v38, %v297_v36 }
  0x91   : > { %v549_v45 = vmax.f32 %v512_v39, %v513_v41  ;;  %v542_v46 = vmax.f32 %v510_v40, %v511_v42 }
  0x92   : > { %v366_v47 = vpop.permute.xlu1 %365  ;;  %v362_v48 = vpop.permute.xlu0 %361 }
  0x93   : > { %v550_v49 = vrot.slane %v549_v45, 4  ;;  %v543_v50 = vrot.slane %v542_v46, 4  ;;  %v2660_v51 = vadd.f32 %v366_v47, %v301_v43  ;;  %v2662_v52 = vadd.f32 %v362_v48, %v300_v44 }
  0x95   : > { %v551_v54 = vmax.f32 %v549_v45, %v550_v49  ;;  %v544_v55 = vmax.f32 %v542_v46, %v543_v50  ;;  %v556_v56 = vmax.f32 %v2662_v52, %v2660_v51  ;;  %v305_v50 = vld [vmem:[%s2652_s26 + $0x48] sm:$0xff] }
  0x96   : > { %v432_v58 = vpop.permute.xlu1 %431  ;;  %v428_v59 = vpop.permute.xlu0 %427 }
  0x97   : > { %v552_v60 = vrot.slane %v551_v54, 2  ;;  %v545_v61 = vrot.slane %v544_v55, 2  ;;  %v557_v62 = vrot.slane %v556_v56, 4  ;;  %v2668_v63 = vadd.f32 %v432_v58, %v313_v53 }
  0x98   : > { %v2670_v0 = vadd.f32 %v428_v59, %v312_v57 }
  0x99   : > { %v553_v2 = vmax.f32 %v551_v54, %v552_v60  ;;  %v546_v3 = vmax.f32 %v544_v55, %v545_v61  ;;  %v558_v4 = vmax.f32 %v556_v56, %v557_v62  ;;  %v304_v56 = vld [vmem:[%s2652_s26 + $0x40] sm:$0xff] }
  0x9a   : > { %v598_v6 = vmax.f32 %v2670_v0, %v2668_v63  ;;  %v443_v7 = vpop.permute.xlu1 %442  ;;  %v439_v8 = vpop.permute.xlu0 %438 }
  0x9b   : > { %v554_v9 = vrot.slane %v553_v2, 1  ;;  %v547_v10 = vrot.slane %v546_v3, 1  ;;  %v559_v11 = vrot.slane %v558_v4, 2  ;;  %v2676_v12 = vadd.f32 %v443_v7, %v315_v1 }
  0x9c   : > { %v599_v13 = vrot.slane %v598_v6, 4  ;;  %v2678_v14 = vadd.f32 %v439_v8, %v314_v5  ;;  %v319_v5 = vld [vmem:[%s2652_s26 + $0xb8] sm:$0xff] }
  0x9d   : > { %v555_v15 = vmax.f32 %v553_v2, %v554_v9  ;;  %v548_v16 = vmax.f32 %v546_v3, %v547_v10  ;;  %v560_v17 = vmax.f32 %v558_v4, %v559_v11  ;;  %v318_v9 = vld [vmem:[%s2652_s26 + $0xb0] sm:$0xff] }
  0x9e   : > { %v600_v19 = vmax.f32 %v598_v6, %v599_v13  ;;  %v605_v20 = vmax.f32 %v2678_v14, %v2676_v12  ;;  %v377_v21 = vpop.permute.xlu1 %376  ;;  %v373_v22 = vpop.permute.xlu0 %372 }
  0x9f   : > { %v656_v24 = vsub.f32 %v512_v39, %v555_v15  ;;  %v657_v25 = vsub.f32 %v513_v41, %v555_v15  ;;  %v654_v26 = vsub.f32 %v510_v40, %v548_v16  ;;  %v655_v27 = vsub.f32 %v511_v42, %v548_v16 }
  0xa0   : > { %v561_v28 = vrot.slane %v560_v17, 1  ;;  %v601_v29 = vrot.slane %v600_v19, 2  ;;  %v606_v30 = vrot.slane %v605_v20, 4  ;;  %v2684_v31 = vadd.f32 %v377_v21, %v303_v18 }
  0xa1   : > { %v690_v34 = vmul.f32 1.442695, %v656_v24  ;;  %v692_v35 = vmul.f32 1.442695, %v657_v25  ;;  %v686_v36 = vmul.f32 1.442695, %v654_v26  ;;  %v2688_v37 = vadd.f32 %v373_v22, %v302_v23 }
  0xa2   : > { %v688_v38 = vmul.f32 1.442695, %v655_v27  ;;  %v562_v43 = vmax.f32 %v560_v17, %v561_v28  ;;  %v602_v44 = vmax.f32 %v600_v19, %v601_v29  ;;  %v607_v39 = vmax.f32 %v605_v20, %v606_v30  ;;  %v454_v40 = vpop.permute.xlu1 %453  ;;  %v450_v41 = vpop.permute.xlu0 %449 }
  0xa3   : > { %2430 = vpow2.f32 %v690_v34  ;;  %v563_v42 = vmax.f32 %v2688_v37, %v2684_v31  ;;  %v2692_v45 = vadd.f32 %v454_v40, %v317_v32  ;;  %v2694_v46 = vadd.f32 %v450_v41, %v316_v33 }
  0xa4   : > { %2432 = vpow2.f32 %v692_v35  ;;  %v658_v47 = vsub.f32 %v2662_v52, %v562_v43  ;;  %v659_v48 = vsub.f32 %v2660_v51, %v562_v43  ;;  %v603_v49 = vrot.slane %v602_v44, 1 }
  0xa5   : > { %2434 = vpow2.f32 %v686_v36  ;;  %v608_v53 = vrot.slane %v607_v39, 2  ;;  %v564_v54 = vrot.slane %v563_v42, 4  ;;  %v612_v55 = vmax.f32 %v2694_v46, %v2692_v45 }
  0xa6   : > { %2436 = vpow2.f32 %v688_v38  ;;  %v694_v57 = vmul.f32 1.442695, %v658_v47  ;;  %v696_v58 = vmul.f32 1.442695, %v659_v48  ;;  %v604_v59 = vmax.f32 %v602_v44, %v603_v49  ;;  %v388_v60 = vpop.permute.xlu1 %387  ;;  %v384_v61 = vpop.permute.xlu0 %383  ;;  %v307_v48 = vld [vmem:[%s2652_s26 + $0x58] sm:$0xff] }
  0xa7   : > { %v609_v52 = vmax.f32 %v607_v39, %v608_v53  ;;  %v565_v62 = vmax.f32 %v563_v42, %v564_v54  ;;  %v613_v51 = vrot.slane %v612_v55, 4  ;;  %v2702_v1 = vadd.f32 %v388_v60, %v305_v50 }
  0xa8   : > { %2438 = vpow2.f32 %v694_v57  ;;  %v670_v2 = vsub.f32 %v2670_v0, %v604_v59  ;;  %v671_v3 = vsub.f32 %v2668_v63, %v604_v59  ;;  %v2706_v4 = vadd.f32 %v384_v61, %v304_v56 }
  0xa9   : > { %2440 = vpow2.f32 %v696_v58  ;;  %v610_v6 = vrot.slane %v609_v52, 1  ;;  %v566_v7 = vrot.slane %v565_v62, 2  ;;  %v614_v8 = vmax.f32 %v612_v55, %v613_v51 }
  0xaa   : > { %v718_v10 = vmul.f32 1.442695, %v670_v2  ;;  %v720_v11 = vmul.f32 1.442695, %v671_v3  ;;  %v570_v13 = vmax.f32 %v2706_v4, %v2702_v1  ;;  %v465_v15 = vpop.permute.xlu1 %464  ;;  %v461_v16 = vpop.permute.xlu0 %460 }
  0xab   : > { %v611_v17 = vmax.f32 %v609_v52, %v610_v6  ;;  %v567_v18 = vmax.f32 %v565_v62, %v566_v7  ;;  %v615_v0 = vrot.slane %v614_v8, 2  ;;  %v2712_v19 = vadd.f32 %v465_v15, %v319_v5  ;;  %v306_v52 = vld [vmem:[%s2652_s26 + $0x50] sm:$0xff] }
  0xac   : > { %2442 = vpow2.f32 %v718_v10  ;;  %v571_v63 = vrot.slane %v570_v13, 4  ;;  %v2714_v20 = vadd.f32 %v461_v16, %v318_v9 }
  0xad   : > { %v2716_v21 = vpop.eup %2430  ;;  %2444 = vpow2.f32 %v720_v11  ;;  %v672_v22 = vsub.f32 %v2678_v14, %v611_v17  ;;  %v673_v23 = vsub.f32 %v2676_v12, %v611_v17  ;;  %v568_v24 = vrot.slane %v567_v18, 1 }
  0xae   : > { %v2720_v25 = vpop.eup %2432  ;;  %v616_v26 = vmax.f32 %v614_v8, %v615_v0  ;;  %v572_v27 = vmax.f32 %v570_v13, %v571_v63  ;;  %v619_v28 = vmax.f32 %v2714_v20, %v2712_v19  ;;  %v399_v47 = vpop.permute.xlu1 %398 }
  0xaf   : > { %v2724_v29 = vpop.eup %2434  ;;  %v757_v30 = vadd.f32 %v2720_v25, %v2716_v21  ;;  %v722_v32 = vmul.f32 1.442695, %v672_v22  ;;  %v724_v33 = vmul.f32 1.442695, %v673_v23  ;;  %v569_v34 = vmax.f32 %v567_v18, %v568_v24  ;;  %v395_v61 = vpop.permute.xlu0 %394 }
  0xb0   : > { %v2728_v14 = vpop.eup %2436  ;;  %v617_v12 = vrot.slane %v616_v26, 1  ;;  %v573_v35 = vrot.slane %v572_v27, 2  ;;  %v620_v36 = vrot.slane %v619_v28, 4  ;;  %v2743_v60 = vadd.f32 %v399_v47, %v307_v48 }
  0xb1   : > { %v758_v38 = vrot.slane %v757_v30, 4  ;;  %v750_v43 = vadd.f32 %v2728_v14, %v2724_v29  ;;  %2446 = vpow2.f32 %v722_v32  ;;  %v660_v44 = vsub.f32 %v2688_v37, %v569_v34 }
  0xb2   : > { %v2733_v39 = vpop.eup %2438  ;;  %2448 = vpow2.f32 %v724_v33  ;;  %v661_v40 = vsub.f32 %v2684_v31, %v569_v34  ;;  %v618_v41 = vmax.f32 %v616_v26, %v617_v12  ;;  %v574_v42 = vmax.f32 %v572_v27, %v573_v35 }
  0xb3   : > { %v2737_v49 = vpop.eup %2440  ;;  %v759_v50 = vadd.f32 %v758_v38, %v757_v30  ;;  %v751_v53 = vrot.slane %v750_v43, 4  ;;  %v698_v54 = vmul.f32 1.442695, %v660_v44  ;;  %v621_v55 = vmax.f32 %v619_v28, %v620_v36 }
  0xb4   : > { %v764_v56 = vadd.f32 %v2737_v49, %v2733_v39  ;;  %v700_v37 = vmul.f32 1.442695, %v661_v40  ;;  %v674_v57 = vsub.f32 %v2694_v46, %v618_v41  ;;  %v675_v58 = vsub.f32 %v2692_v45, %v618_v41 }
  0xb5   : > { %v760_v31 = vrot.slane %v759_v50, 2  ;;  %v752_v59 = vadd.f32 %v751_v53, %v750_v43  ;;  %2450 = vpow2.f32 %v698_v54  ;;  %v575_v46 = vrot.slane %v574_v42, 1 }
  0xb6   : > { %v2746_v62 = vpop.eup %2442  ;;  %v765_v51 = vrot.slane %v764_v56, 4  ;;  %2452 = vpow2.f32 %v700_v37  ;;  %v726_v2 = vmul.f32 1.442695, %v674_v57  ;;  %v728_v3 = vmul.f32 1.442695, %v675_v58  ;;  %v321_v57 = vld [vmem:[%s2652_s26 + $0xc8] sm:$0xff]  ;;  %v472_v58 = vpop.permute.xlu0 %471 }
  0xb7   : > { %v2748_v5 = vpop.eup %2444  ;;  %v761_v6 = vadd.f32 %v760_v31, %v759_v50  ;;  %v753_v7 = vrot.slane %v752_v59, 2  ;;  %v622_v8 = vrot.slane %v621_v55, 2  ;;  %v2752_v10 = vadd.f32 %v395_v61, %v306_v52  ;;  %v320_v31 = vld [vmem:[%s2652_s26 + $0xc0] sm:$0xff] }
  0xb8   : > { %v766_v45 = vadd.f32 %v765_v51, %v764_v56  ;;  %v806_v9 = vadd.f32 %v2748_v5, %v2746_v62  ;;  %2454 = vpow2.f32 %v726_v2  ;;  %v576_v27 = vmax.f32 %v574_v42, %v575_v46  ;;  %v2796_v46 = vld [vmem:[%s2786_s30 + $0x28] sm:$0xff] }
  0xb9   : > { %v762_v11 = vrot.slane %v761_v6, 1  ;;  %v754_v13 = vadd.f32 %v753_v7, %v752_v59  ;;  %2456 = vpow2.f32 %v728_v3  ;;  %v623_v17 = vmax.f32 %v621_v55, %v622_v8  ;;  %v2793_v7 = vld [vmem:[%s2786_s30 + $0x20] sm:$0xff] }
  0xba   : > { %v767_v15 = vrot.slane %v766_v45, 2  ;;  %v807_v16 = vrot.slane %v806_v9, 4  ;;  %v577_v22 = vmax.f32 %v2752_v10, %v2743_v60  ;;  %v662_v47 = vsub.f32 %v2706_v4, %v576_v27 }
  0xbb   : > { %v2754_v18 = vpop.eup %2446  ;;  %v763_v0 = vadd.f32 %v762_v11, %v761_v6  ;;  %v755_v63 = vrot.slane %v754_v13, 1  ;;  %v624_v28 = vrot.slane %v623_v17, 1  ;;  %v663_v37 = vsub.f32 %v2702_v1, %v576_v27 }
  0xbc   : > { %v2758_v23 = vpop.eup %2448  ;;  %v768_v24 = vadd.f32 %v767_v15, %v766_v45  ;;  %v808_v26 = vadd.f32 %v807_v16, %v806_v9  ;;  %v578_v33 = vrot.slane %v577_v22, 4  ;;  %v702_v61 = vmul.f32 1.442695, %v662_v47 }
  0xbd   : > { %2458 = vrcp.f32 %v763_v0  ;;  %v756_v30 = vadd.f32 %v755_v63, %v754_v13  ;;  %v813_v32 = vadd.f32 %v2758_v23, %v2754_v18  ;;  %v625_v35 = vmax.f32 %v623_v17, %v624_v28 }
  0xbe   : > { %v769_v34 = vrot.slane %v768_v24, 1  ;;  %v809_v12 = vrot.slane %v808_v26, 2  ;;  %v579_v50 = vmax.f32 %v577_v22, %v578_v33  ;;  %v2790_v2 = vadd.f32 %v472_v58, %v320_v31 }
  0xbf   : > { %v2762_v36 = vpop.eup %2450  ;;  %2460 = vrcp.f32 %v756_v30  ;;  %v814_v38 = vrot.slane %v813_v32, 4  ;;  %v676_v41 = vsub.f32 %v2714_v20, %v625_v35  ;;  %v677_v48 = vsub.f32 %v2712_v19, %v625_v35  ;;  %v476_v20 = vpop.permute.xlu1 %475 }
  0xc0   : > { %v2764_v43 = vpop.eup %2452  ;;  %v770_v44 = vadd.f32 %v769_v34, %v768_v24  ;;  %v810_v40 = vadd.f32 %v809_v12, %v808_v26  ;;  %v580_v52 = vrot.slane %v579_v50, 2  ;;  %v2788_v51 = vadd.f32 %v476_v20, %v321_v57 }
  0xc1   : > { %v815_v42 = vadd.f32 %v814_v38, %v813_v32  ;;  %v771_v55 = vadd.f32 %v2764_v43, %v2762_v36  ;;  %v704_v6 = vmul.f32 1.442695, %v663_v37  ;;  %v730_v13 = vmul.f32 1.442695, %v676_v41  ;;  %v406_v41 = vpop.permute.xlu0 %405  ;;  %v2839_v37 = vld [vmem:[%s2786_s30] sm:$0xff] }
  0xc2   : > { %v2770_v53 = vpop.eup %2454  ;;  %2462 = vrcp.f32 %v770_v44  ;;  %v811_v54 = vrot.slane %v810_v40, 1  ;;  %v581_v15 = vmax.f32 %v579_v50, %v580_v52  ;;  %v626_v63 = vmax.f32 %v2790_v2, %v2788_v51 }
  0xc3   : > { %v2774_v56 = vpop.eup %2456  ;;  %v816_v19 = vrot.slane %v815_v42, 2  ;;  %v772_v1 = vrot.slane %v771_v55, 4  ;;  %v732_v28 = vmul.f32 1.442695, %v677_v48  ;;  %v410_v44 = vpop.permute.xlu1 %409 }
  0xc4   : > { %v812_v59 = vadd.f32 %v811_v54, %v810_v40  ;;  %v820_v4 = vadd.f32 %v2774_v56, %v2770_v53  ;;  %v582_v33 = vrot.slane %v581_v15, 1  ;;  %v627_v38 = vrot.slane %v626_v63, 4  ;;  %v309_v40 = vld [vmem:[%s2652_s26 + $0x68] sm:$0xff] }
  0xc5   : > { %v817_v11 = vadd.f32 %v816_v19, %v815_v42  ;;  %v773_v0 = vadd.f32 %v772_v1, %v771_v55  ;;  %v2843_v58 = vadd.f32 %v410_v44, %v309_v40  ;;  %v2857_v1 = vld [vmem:[%s2786_s30 + $0x10] sm:$0xff] }
  0xc6   : > { %2464 = vrcp.f32 %v812_v59  ;;  %v821_v35 = vrot.slane %v820_v4, 4  ;;  %v2841_v57 = vmax.f32 %v581_v15, %v582_v33 }
  0xc7   : > { %v2459_v3 = vpop.eup %2458  ;;  %2466 = vpow2.f32 %v702_v61  ;;  %v818_v32 = vrot.slane %v817_v11, 1  ;;  %v774_v12 = vrot.slane %v773_v0, 2  ;;  %v2852_v61 = vmax.f32 %v626_v63, %v627_v38  ;;  %v2873_v63 = vld [vmem:[%s2786_s30 + $0x18] sm:$0xff] }
  0xc8   : > { %v2799_v8 = vmul.f32 %v2459_v3, %v2716_v21  ;;  %v2802_v45 = vmul.f32 %v2459_v3, %v2720_v25  ;;  %2468 = vpow2.f32 %v704_v6  ;;  %v822_v19 = vadd.f32 %v821_v35, %v820_v4 }
  0xc9   : > { %v2461_v9 = vpop.eup %2460  ;;  %2470 = vpow2.f32 %v730_v13  ;;  %v819_v20 = vadd.f32 %v818_v32, %v817_v11  ;;  %v775_v11 = vadd.f32 %v774_v12, %v773_v0 }
  0xca   : > { %v912_v16 = vmul.f32 %v2799_v8, %v2799_v8  ;;  %v913_v17 = vmul.f32 %v2802_v45, %v2802_v45  ;;  %v1738_v21 = vmul.f32 %v2793_v7, %v2799_v8  ;;  %v1739_v25 = vmul.f32 %v2796_v46, %v2802_v45 }
  0xcb   : > { %v2815_v26 = vmul.f32 %v2461_v9, %v2724_v29  ;;  %v2818_v27 = vmul.f32 %v2461_v9, %v2728_v14  ;;  %v308_v29 = vld [vmem:[%s2652_s26 + $0x60] sm:$0xff]  ;;  %2472 = vpow2.f32 %v732_v28  ;;  %v1186_v13 = vmul.f32 %v2839_v37, %v2799_v8 }
  0xcc   : > { %v2463_v22 = vpop.eup %2462  ;;  %v949_v24 = vadd.f32 %v913_v17, %v912_v16  ;;  %v2820_v30 = vadd.f32 %v1739_v25, %v1738_v21  ;;  %2474 = vrcp.f32 %v819_v20  ;;  %v1466_v38 = vmul.f32 %v2873_v63, %v2802_v45 }
  0xcd   : > { %v910_v14 = vmul.f32 %v2815_v26, %v2815_v26  ;;  %v911_v42 = vmul.f32 %v2818_v27, %v2818_v27  ;;  %v2829_v47 = vmul.f32 %v2463_v22, %v2733_v39  ;;  %v2832_v48 = vmul.f32 %v2463_v22, %v2737_v49  ;;  %v2848_v49 = vld [vmem:[%s2786_s30 + $0x8] sm:$0xff] }
  0xce   : > { %3956 = vst [vmem:[#allocation2_spill] sm:$0xff] %v2820_v30  ;;  %v950_v34 = vrot.slane %v949_v24, 4  ;;  %v1736_v50 = vmul.f32 %v2793_v7, %v2815_v26  ;;  %v1737_v54 = vmul.f32 %v2796_v46, %v2818_v27  ;;  %v2845_v39 = vadd.f32 %v406_v41, %v308_v29 }
  0xcf   : > { %v942_v3 = vadd.f32 %v911_v42, %v910_v14  ;;  %v1740_v6 = vmul.f32 %v2793_v7, %v2829_v47  ;;  %v1741_v9 = vmul.f32 %v2796_v46, %v2832_v48  ;;  %v914_v4 = vmul.f32 %v2829_v47, %v2829_v47 }
  0xd0   : > { %v2465_v55 = vpop.eup %2464  ;;  %v951_v31 = vadd.f32 %v950_v34, %v949_v24  ;;  %v2850_v59 = vadd.f32 %v1737_v54, %v1736_v50  ;;  %v915_v15 = vmul.f32 %v2832_v48, %v2832_v48  ;;  %v1187_v21 = vmul.f32 %v2848_v49, %v2802_v45 }
  0xd1   : > { %v2854_v52 = vpop.eup %2466  ;;  %v887_v16 = vmul.f32 %v2465_v55, %v2746_v62  ;;  %v2877_v25 = vadd.f32 %v1741_v9, %v1740_v6  ;;  %v888_v0 = vmul.f32 %v2465_v55, %v2748_v5  ;;  %v1465_v24 = vmul.f32 %v2857_v1, %v2799_v8 }
  0xd2   : > { %3957 = vst [vmem:[#allocation3_spill] sm:$0xff] %v2850_v59  ;;  %v2870_v17 = vpop.eup %2468  ;;  %v952_v22 = vrot.slane %v951_v31, 2  ;;  %v943_v33 = vrot.slane %v942_v3, 4  ;;  %v956_v5 = vadd.f32 %v915_v15, %v914_v4  ;;  %v664_v14 = vsub.f32 %v2752_v10, %v2841_v57 }
  0xd3   : > { %3958 = vst [vmem:[#allocation4_spill] sm:$0xff] %v2877_v25  ;;  %v926_v28 = vmul.f32 %v887_v16, %v887_v16  ;;  %v1200_v32 = vmul.f32 %v2839_v37, %v887_v16  ;;  %v2883_v62 = vpop.eup %2470  ;;  %v927_v34 = vmul.f32 %v888_v0, %v888_v0  ;;  %v1201_v12 = vmul.f32 %v2848_v49, %v888_v0 }
  0xd4   : > { %v1479_v35 = vmul.f32 %v2857_v1, %v887_v16  ;;  %v1480_v44 = vmul.f32 %v2873_v63, %v888_v0  ;;  %v1752_v40 = vmul.f32 %v2793_v7, %v887_v16  ;;  %v1753_v29 = vmul.f32 %v2796_v46, %v888_v0 }
  0xd5   : > { %v998_v8 = vadd.f32 %v927_v34, %v926_v28  ;;  %v2891_v41 = vadd.f32 %v1201_v12, %v1200_v32  ;;  %v2896_v42 = vpop.eup %2472  ;;  %v776_v54 = vrot.slane %v775_v11, 1  ;;  %v823_v55 = vrot.slane %v822_v19, 2 }
  0xd6   : > { %v2898_v50 = vadd.f32 %v1480_v44, %v1479_v35  ;;  %v665_v45 = vsub.f32 %v2743_v60, %v2841_v57  ;;  %v2902_v20 = vadd.f32 %v952_v22, %v951_v31  ;;  %v2904_v6 = vadd.f32 %v1187_v21, %v1186_v13 }
  0xd7   : > { %3959 = vst [vmem:[#allocation5_spill] sm:$0xff] %v2891_v41  ;;  %v944_v9 = vadd.f32 %v943_v33, %v942_v3  ;;  %v2906_v4 = vadd.f32 %v1753_v29, %v1752_v40  ;;  %v2908_v15 = vadd.f32 %v1466_v38, %v1465_v24  ;;  %v957_v16 = vrot.slane %v956_v5, 4 }
  0xd8   : > { %3960 = vst [vmem:[#allocation6_spill] sm:$0xff] %v2898_v50  ;;  %v777_v10 = vadd.f32 %v776_v54, %v775_v11  ;;  %v824_v0 = vadd.f32 %v823_v55, %v822_v19  ;;  %v1184_v28 = vmul.f32 %v2839_v37, %v2815_v26  ;;  %v1185_v32 = vmul.f32 %v2848_v49, %v2818_v27  ;;  %v2475_v11 = vpop.eup %2474 }
  0xd9   : > { %v1463_v60 = vmul.f32 %v2857_v1, %v2815_v26  ;;  %v778_v57 = vadd.f32 %v2870_v17, %v2854_v52  ;;  %v1464_v31 = vmul.f32 %v2873_v63, %v2818_v27  ;;  %v827_v19 = vadd.f32 %v2896_v42, %v2883_v62 }
  0xda   : > { %2476 = vrcp.f32 %v777_v10  ;;  %v825_v3 = vrot.slane %v824_v0, 1  ;;  %v954_v13 = vrot.slane %v2902_v20, 1  ;;  %v945_v21 = vrot.slane %v944_v9, 2 }
  0xdb   : > { %v999_v22 = vrot.slane %v998_v8, 4  ;;  %v779_v24 = vrot.slane %v778_v57, 4  ;;  %v958_v33 = vadd.f32 %v957_v16, %v956_v5  ;;  %v890_v26 = vmul.f32 %v2475_v11, %v2754_v18 }
  0xdc   : > { %v891_v34 = vmul.f32 %v2475_v11, %v2758_v23  ;;  %v826_v12 = vadd.f32 %v825_v3, %v824_v0  ;;  %v828_v38 = vrot.slane %v827_v19, 4  ;;  %v706_v27 = vmul.f32 1.442695, %v664_v14 }
  0xdd   : > { %v780_v35 = vadd.f32 %v779_v24, %v778_v57  ;;  %v708_v44 = vmul.f32 1.442695, %v665_v45  ;;  %v928_v40 = vmul.f32 %v890_v26, %v890_v26  ;;  %v1202_v54 = vmul.f32 %v2839_v37, %v890_v26 }
  0xde   : > { %v929_v29 = vmul.f32 %v891_v34, %v891_v34  ;;  %v1203_v55 = vmul.f32 %v2848_v49, %v891_v34  ;;  %v1000_v10 = vadd.f32 %v999_v22, %v998_v8  ;;  %v1481_v25 = vmul.f32 %v2857_v1, %v890_v26 }
  0xdf   : > { %v1482_v5 = vmul.f32 %v2873_v63, %v891_v34  ;;  %v1754_v18 = vmul.f32 %v2793_v7, %v890_v26  ;;  %v1755_v14 = vmul.f32 %v2796_v46, %v891_v34  ;;  %2478 = vrcp.f32 %v826_v12 }
  0xe0   : > { %v2930_v16 = vadd.f32 %v929_v29, %v928_v40  ;;  %v2932_v23 = vadd.f32 %v1203_v55, %v1202_v54  ;;  %v781_v0 = vrot.slane %v780_v35, 2  ;;  %v829_v57 = vadd.f32 %v828_v38, %v827_v19  ;;  %v322_v55 = vld [vmem:[%s2652_s26 + $0xd0] sm:$0xff] }
  0xe1   : > { %v2935_v45 = vadd.f32 %v1482_v5, %v1481_v25  ;;  %2480 = vpow2.f32 %v706_v27  ;;  %v946_v3 = vadd.f32 %v945_v21, %v944_v9  ;;  %v959_v8 = vrot.slane %v958_v33, 2 }
  0xe2   : > { %3961 = vst [vmem:[#allocation7_spill] sm:$0xff] %v2932_v23  ;;  %v2937_v11 = vadd.f32 %v1755_v14, %v1754_v18  ;;  %2482 = vpow2.f32 %v708_v44  ;;  %v1001_v22 = vrot.slane %v1000_v10, 2  ;;  %v782_v24 = vadd.f32 %v781_v0, %v780_v35 }
  0xe3   : > { %3962 = vst [vmem:[#allocation8_spill] sm:$0xff] %v2935_v45  ;;  %v830_v26 = vrot.slane %v829_v57, 2  ;;  %v629_v40 = vrot.slane %v2852_v61, 2  ;;  %v2941_v25 = vadd.f32 %v1185_v32, %v1184_v28  ;;  %v2943_v12 = vadd.f32 %v1464_v31, %v1463_v60  ;;  %v487_v32 = vpop.permute.xlu1 %486  ;;  %v323_v60 = vld [vmem:[%s2652_s26 + $0xd8] sm:$0xff]  ;;  %v483_v31 = vpop.permute.xlu0 %482 }
  0xe4   : > { %v2477_v29 = vpop.eup %2476  ;;  %v584_v9 = vmax.f32 %v2845_v39, %v2843_v58  ;;  %v2949_v19 = vmul.f32 %v2839_v37, %v2829_v47  ;;  %v783_v35 = vrot.slane %v782_v24, 1  ;;  %v947_v27 = vrot.slane %v946_v3, 1 }
  0xe5   : > { %v2952_v21 = vmul.f32 %v2477_v29, %v2762_v36  ;;  %v831_v38 = vadd.f32 %v830_v26, %v829_v57  ;;  %v960_v44 = vadd.f32 %v959_v8, %v958_v33  ;;  %v630_v54 = vmax.f32 %v2852_v61, %v629_v40 }
  0xe6   : > { %v585_v28 = vrot.slane %v584_v9, 4  ;;  %v2958_v5 = vadd.f32 %v954_v13, %v2902_v20  ;;  %v2963_v36 = vmul.f32 %v2857_v1, %v2829_v47  ;;  %v1002_v14 = vadd.f32 %v1001_v22, %v1000_v10 }
  0xe7   : > { %v2968_v61 = vmul.f32 %v2793_v7, %v2952_v21  ;;  %v784_v33 = vadd.f32 %v783_v35, %v782_v24  ;;  %v832_v57 = vrot.slane %v831_v38, 1  ;;  %v631_v8 = vrot.slane %v630_v54, 1 }
  0xe8   : > { %v586_v26 = vmax.f32 %v584_v9, %v585_v28  ;;  %v2970_v40 = vadd.f32 %v487_v32, %v323_v60  ;;  %v2972_v20 = vadd.f32 %v483_v31, %v322_v55  ;;  %v2974_v34 = vadd.f32 %v947_v27, %v946_v3 }
  0xe9   : > { %3963 = vst [vmem:[#allocation9_spill] sm:$0xff] %v2968_v61  ;;  %v2479_v13 = vpop.eup %2478  ;;  %v961_v47 = vrot.slane %v960_v44, 1  ;;  %2484 = vrcp.f32 %v784_v33  ;;  %v833_v10 = vadd.f32 %v832_v57, %v831_v38  ;;  %v1003_v18 = vrot.slane %v1002_v14, 1 }
  0xea   : > { %v1825_v0 = vrot.slane %v2906_v4, 4  ;;  %v893_v24 = vmul.f32 %v2479_v13, %v2770_v53  ;;  %v894_v35 = vmul.f32 %v2479_v13, %v2774_v56  ;;  %v2984_v28 = vmul.f32 %v2477_v29, %v2764_v43 }
  0xeb   : > { %v2976_v22 = vpop.eup %2480  ;;  %2486 = vrcp.f32 %v833_v10  ;;  %v632_v3 = vmax.f32 %v630_v54, %v631_v8  ;;  %v587_v27 = vrot.slane %v586_v26, 2  ;;  %v633_v31 = vmax.f32 %v2972_v20, %v2970_v40 }
  0xec   : > { %v2981_v9 = vpop.eup %2482  ;;  %v930_v32 = vmul.f32 %v893_v24, %v893_v24  ;;  %v931_v60 = vmul.f32 %v894_v35, %v894_v35  ;;  %v1204_v38 = vmul.f32 %v2839_v37, %v893_v24  ;;  %v1205_v55 = vmul.f32 %v2848_v49, %v894_v35 }
  0xed   : > { %v1483_v53 = vmul.f32 %v2857_v1, %v893_v24  ;;  %v1484_v56 = vmul.f32 %v2873_v63, %v894_v35  ;;  %v1756_v33 = vmul.f32 %v2793_v7, %v893_v24  ;;  %v1006_v43 = vrot.slane %v2930_v16, 4 }
  0xee   : > { %v2994_v29 = vadd.f32 %v931_v60, %v930_v32  ;;  %v1757_v54 = vmul.f32 %v2796_v46, %v894_v35  ;;  %v785_v57 = vadd.f32 %v2981_v9, %v2976_v22  ;;  %v2999_v8 = vadd.f32 %v1205_v55, %v1204_v38  ;;  %v421_v60 = vpop.permute.xlu1 %420 }
  0xef   : > { %v3001_v13 = vadd.f32 %v1484_v56, %v1483_v53  ;;  %v678_v10 = vsub.f32 %v2790_v2, %v632_v3  ;;  %v679_v61 = vsub.f32 %v2788_v51, %v632_v3  ;;  %v916_v63 = vmul.f32 %v2952_v21, %v2952_v21  ;;  %v417_v56 = vpop.permute.xlu0 %416  ;;  %v310_v2 = vld [vmem:[%s2652_s26 + $0x70] sm:$0xff] }
  0xf0   : > { %3964 = vst [vmem:[#allocation10_spill] sm:$0xff] %v2999_v8  ;;  %v917_v24 = vmul.f32 %v2984_v28, %v2984_v28  ;;  %v3009_v32 = vadd.f32 %v1757_v54, %v1756_v33  ;;  %v786_v35 = vrot.slane %v785_v57, 4  ;;  %v588_v38 = vmax.f32 %v586_v26, %v587_v27 }
  0xf1   : > { %3965 = vst [vmem:[#allocation11_spill] sm:$0xff] %v3001_v13  ;;  %v734_v30 = vmul.f32 1.442695, %v678_v10  ;;  %v736_v59 = vmul.f32 1.442695, %v679_v61  ;;  %v634_v55 = vrot.slane %v633_v31, 4  ;;  %v3011_v53 = vadd.f32 %v961_v47, %v960_v44 }
  0xf2   : > { %3966 = vst [vmem:[#allocation12_spill] sm:$0xff] %v3009_v32  ;;  %v1007_v51 = vadd.f32 %v1006_v43, %v2930_v16  ;;  %v787_v3 = vadd.f32 %v786_v35, %v785_v57  ;;  %v3016_v33 = vadd.f32 %v1825_v0, %v2906_v4  ;;  %v589_v54 = vrot.slane %v588_v38, 1  ;;  %v311_v35 = vld [vmem:[%s2652_s26 + $0x78] sm:$0xff]  ;;  %v324_v0 = vld [vmem:[%s2652_s26 + $0xe0] sm:$0xff] }
  0xf3   : > { %v2485_v13 = vpop.eup %2484  ;;  %2488 = vpow2.f32 %v734_v30  ;;  %v635_v10 = vmax.f32 %v633_v31, %v634_v55  ;;  %v3018_v61 = vadd.f32 %v1003_v18, %v1002_v14  ;;  %v1832_v44 = vrot.slane %v2937_v11, 4  ;;  %v498_v14 = vpop.permute.xlu1 %497 }
  0xf4   : > { %3967 = vst [vmem:[#allocation13_spill] sm:$0xff] %v3016_v33  ;;  %v963_v26 = vadd.f32 %v917_v24, %v916_v63  ;;  %v3022_v47 = vmul.f32 %v2485_v13, %v2854_v52  ;;  %v788_v27 = vrot.slane %v787_v3, 2  ;;  %2490 = vpow2.f32 %v736_v59 }
  0xf5   : > { %3968 = vst [vmem:[#allocation14_spill] sm:$0xff] %v3018_v61  ;;  %v2487_v16 = vpop.eup %2486  ;;  %v590_v43 = vmax.f32 %v588_v38, %v589_v54  ;;  %v636_v57 = vrot.slane %v635_v10, 2  ;;  %v1008_v4 = vrot.slane %v1007_v51, 2  ;;  %v3029_v18 = vmul.f32 %v2485_v13, %v2870_v17  ;;  %v494_v17 = vpop.permute.xlu0 %493 }
  0xf6   : > { %v3032_v31 = vmul.f32 %v2487_v16, %v2883_v62  ;;  %v3035_v52 = vmul.f32 %v2487_v16, %v2896_v42  ;;  %v789_v59 = vadd.f32 %v788_v27, %v787_v3  ;;  %v3039_v55 = vadd.f32 %v421_v60, %v311_v35  ;;  %v325_v3 = vld [vmem:[%s2652_s26 + $0xe8] sm:$0xff] }
  0xf7   : > { %v666_v63 = vsub.f32 %v2845_v39, %v590_v43  ;;  %v667_v24 = vsub.f32 %v2843_v58, %v590_v43  ;;  %v637_v38 = vmax.f32 %v635_v10, %v636_v57  ;;  %v3041_v54 = vadd.f32 %v417_v56, %v310_v2  ;;  %v509_v30 = vpop.permute.xlu1 %508 }
  0xf8   : > { %3969 = vst [vmem:[#allocation15_spill] sm:$0xff] %v3035_v52  ;;  %v3044_v13 = vadd.f32 %v1832_v44, %v2937_v11  ;;  %v964_v62 = vrot.slane %v963_v26, 4  ;;  %v3048_v42 = vmul.f32 %v2839_v37, %v2952_v21  ;;  %v918_v39 = vmul.f32 %v3022_v47, %v3022_v47 }
  0xf9   : > { %v919_v58 = vmul.f32 %v3029_v18, %v3029_v18  ;;  %v932_v60 = vmul.f32 %v3032_v31, %v3032_v31  ;;  %v1758_v11 = vmul.f32 %v2793_v7, %v3032_v31  ;;  %v1759_v2 = vmul.f32 %v2796_v46, %v3035_v52 }
  0xfa   : > { %3970 = vst [vmem:[#allocation16_spill] sm:$0xff] %v3044_v13  ;;  %v933_v56 = vmul.f32 %v3035_v52, %v3035_v52  ;;  %v790_v10 = vrot.slane %v789_v59, 1  ;;  %v710_v44 = vmul.f32 1.442695, %v666_v63  ;;  %v712_v16 = vmul.f32 1.442695, %v667_v24  ;;  %v505_v24 = vpop.permute.xlu0 %504 }
  0xfb   : > { %v3063_v27 = vadd.f32 %v1008_v4, %v1007_v51  ;;  %v3065_v43 = vadd.f32 %v1759_v2, %v1758_v11  ;;  %v638_v57 = vrot.slane %v637_v38, 1  ;;  %v591_v35 = vmax.f32 %v3041_v54, %v3039_v55  ;;  %v327_v13 = vld [vmem:[%s2652_s26 + $0xf8] sm:$0xff]  ;;  %v326_v11 = vld [vmem:[%s2652_s26 + $0xf0] sm:$0xff] }
  0xfc   : > { %v965_v33 = vadd.f32 %v964_v62, %v963_v26  ;;  %v791_v45 = vadd.f32 %v790_v10, %v789_v59  ;;  %2492 = vpow2.f32 %v710_v44  ;;  %v3073_v50 = vadd.f32 %v498_v14, %v325_v3  ;;  %v1168_v44 = vld [vmem:[%s3889_s3 + $0x10] sm:$0xff] }
  0xfd   : > { %3971 = vst [vmem:[#allocation17_spill] sm:$0xff] %v3065_v43  ;;  %v3071_v46 = vpop.eup %2488  ;;  %v970_v63 = vadd.f32 %v919_v58, %v918_v39  ;;  %2494 = vpow2.f32 %v712_v16  ;;  %v639_v51 = vmax.f32 %v637_v38, %v638_v57  ;;  %v592_v4 = vrot.slane %v591_v35, 4  ;;  %v1169_v16 = vld [vmem:[%s3889_s3 + $0x18] sm:$0xff] }
  0xfe   : > { %v3076_v2 = vpop.eup %2490  ;;  %v1019_v43 = vadd.f32 %v933_v56, %v932_v60  ;;  %2496 = vrcp.f32 %v791_v45  ;;  %v3078_v8 = vadd.f32 %v494_v17, %v324_v0  ;;  %v3080_v23 = vadd.f32 %v509_v30, %v327_v13  ;;  %v1166_v45 = vld [vmem:[%s3889_s3] sm:$0xff]  ;;  %v1167_v30 = vld [vmem:[%s3889_s3 + $0x8] sm:$0xff] }
  0xff   : > { %v1013_v26 = vrot.slane %v2994_v29, 4  ;;  %v834_v14 = vadd.f32 %v3076_v2, %v3071_v46  ;;  %v680_v59 = vsub.f32 %v2972_v20, %v639_v51  ;;  %v681_v38 = vsub.f32 %v2970_v40, %v639_v51 }
 0x100   : > { %v966_v62 = vrot.slane %v965_v33, 2  ;;  %v593_v39 = vmax.f32 %v591_v35, %v592_v4  ;;  %v640_v58 = vmax.f32 %v3078_v8, %v3073_v50  ;;  %v3089_v60 = vadd.f32 %v505_v24, %v326_v11  ;;  %v1170_v4 = vld [vmem:[%s3889_s3 + $0x20] sm:$0xff]  ;;  %v1171_v24 = vld [vmem:[%s3889_s3 + $0x28] sm:$0xff] }
 0x101   : > { %v971_v0 = vrot.slane %v970_v63, 4  ;;  %v835_v17 = vrot.slane %v834_v14, 4  ;;  %v738_v20 = vmul.f32 1.442695, %v680_v59  ;;  %v740_v13 = vmul.f32 1.442695, %v681_v38 }
 0x102   : > { %v1020_v40 = vrot.slane %v1019_v43, 4  ;;  %v594_v3 = vrot.slane %v593_v39, 2  ;;  %v641_v56 = vrot.slane %v640_v58, 4  ;;  %v647_v10 = vmax.f32 %v3089_v60, %v3080_v23 }
 0x103   : > { %v3106_v57 = vadd.f32 %v1013_v26, %v2994_v29  ;;  %v836_v35 = vadd.f32 %v835_v17, %v834_v14  ;;  %2498 = vpow2.f32 %v738_v20  ;;  %v3108_v51 = vpack.c.bf16 %v1167_v30, %v1166_v45  ;;  %v1172_v29 = vld [vmem:[%s3889_s3 + $0x30] sm:$0xff]  ;;  %v1173_v26 = vld [vmem:[%s3889_s3 + $0x38] sm:$0xff] }
 0x104   : > { %v3116_v11 = vadd.f32 %v966_v62, %v965_v33  ;;  %2500 = vpow2.f32 %v740_v13  ;;  %v595_v59 = vmax.f32 %v593_v39, %v594_v3  ;;  %v642_v38 = vmax.f32 %v640_v58, %v641_v56 }
 0x105   : > { %3972 = vst [vmem:[#allocation18_spill] sm:$0xff] %v3108_v51  ;;  %v3124_v14 = vadd.f32 %v971_v0, %v970_v63  ;;  %v837_v45 = vrot.slane %v836_v35, 2  ;;  %v648_v30 = vrot.slane %v647_v10, 4  ;;  %2309 = vmatprep.subr.bf16.mxu0 %v3108_v51  ;;  %2341 = vmatprep.subr.bf16.mxu1 %v3108_v51  ;;  %v3128_v33 = vpack.c.bf16 %v1169_v16, %v1168_v44 }
 0x106   : > { %v3130_v62 = vpop.eup %2492  ;;  %v3132_v39 = vadd.f32 %v1020_v40, %v1019_v43  ;;  %v596_v58 = vrot.slane %v595_v59, 1  ;;  %v643_v17 = vrot.slane %v642_v38, 2  ;;  %2311 = vmatpush3.bf16.msra.mxu0 %v3108_v51  ;;  %2343 = vmatpush3.bf16.msra.mxu1 %v3108_v51  ;;  %v3136_v63 = vpack.c.bf16 %v1171_v24, %v1170_v4 }
 0x107   : > { %3973 = vst [vmem:[#allocation19_spill] sm:$0xff] %v3128_v33  ;;  %v3138_v0 = vpop.eup %2494  ;;  %v838_v13 = vadd.f32 %v837_v45, %v836_v35  ;;  %v649_v3 = vmax.f32 %v647_v10, %v648_v30  ;;  %2313 = vmatprep.subr.bf16.mxu0 %v3128_v33  ;;  %2345 = vmatprep.subr.bf16.mxu1 %v3128_v33  ;;  %2502 = vrsqrt.f32 %v2974_v34  ;;  %vm1056_vm2 = vcmp.eq.f32.partialorder %v2974_v34, inf }
 0x108   : > { %3974 = vst [vmem:[#allocation20_spill] sm:$0xff] %v3136_v63  ;;  %v3143_v43 = vpack.c.bf16 %v1173_v26, %v1172_v29  ;;  %v2497_v40 = vpop.eup %2496  ;;  %v792_v56 = vadd.f32 %v3138_v0, %v3130_v62  ;;  %v597_v44 = vmax.f32 %v595_v59, %v596_v58  ;;  %v644_v16 = vmax.f32 %v642_v38, %v643_v17 }
 0x109   : > { %v3149_v4 = vmul.f32 %v2497_v40, %v2976_v22  ;;  %v3152_v35 = vmul.f32 %v2497_v40, %v2981_v9  ;;  %v839_v10 = vrot.slane %v838_v13, 1  ;;  %v650_v24 = vrot.slane %v649_v3, 2  ;;  %v1174_v22 = vld [vmem:[%s3889_s3 + $0x40] sm:$0xff]  ;;  %v1175_v9 = vld [vmem:[%s3889_s3 + $0x48] sm:$0xff] }
 0x10a   : > { %3975 = vst [vmem:[#allocation21_spill] sm:$0xff] %v3143_v43  ;;  %v793_v45 = vrot.slane %v792_v56, 4  ;;  %v668_v29 = vsub.f32 %v3041_v54, %v597_v44  ;;  %v669_v26 = vsub.f32 %v3039_v55, %v597_v44  ;;  %v645_v30 = vrot.slane %v644_v16, 1  ;;  %2315 = vmatpush3.bf16.msra.mxu0 %v3128_v33  ;;  %2347 = vmatpush3.bf16.msra.mxu1 %v3128_v33 }
 0x10b   : > { %v920_v59 = vmul.f32 %v3149_v4, %v3149_v4  ;;  %v921_v54 = vmul.f32 %v3152_v35, %v3152_v35  ;;  %v840_v55 = vadd.f32 %v839_v10, %v838_v13  ;;  %v651_v38 = vmax.f32 %v649_v3, %v650_v24  ;;  %2317 = vmatprep.subr.bf16.mxu0 %v3136_v63 }
 0x10c   : > { %v794_v58 = vadd.f32 %v793_v45, %v792_v56  ;;  %v714_v17 = vmul.f32 1.442695, %v668_v29  ;;  %v716_v40 = vmul.f32 1.442695, %v669_v26  ;;  %v646_v44 = vmax.f32 %v644_v16, %v645_v30  ;;  %2349 = vmatprep.subr.bf16.mxu1 %v3136_v63  ;;  %v1177_v26 = vld [vmem:[%s3889_s3 + $0x58] sm:$0xff] }
 0x10d   : > { %v3170_v20 = vpop.eup %2498  ;;  %v977_v33 = vadd.f32 %v921_v54, %v920_v59  ;;  %2504 = vrcp.f32 %v840_v55  ;;  %v652_v41 = vrot.slane %v651_v38, 1  ;;  %v3172_v52 = vpack.c.bf16 %v1175_v9, %v1174_v22 }
 0x10e   : > { %v3174_v51 = vpop.eup %2500  ;;  %v795_v61 = vrot.slane %v794_v58, 2  ;;  %2506 = vpow2.f32 %v714_v17  ;;  %v682_v13 = vsub.f32 %v3078_v8, %v646_v44  ;;  %v683_v3 = vsub.f32 %v3073_v50, %v646_v44  ;;  %2319 = vmatpush3.bf16.msra.mxu0 %v3136_v63  ;;  %2351 = vmatpush3.bf16.msra.mxu1 %v3136_v63  ;;  %v1176_v8 = vld [vmem:[%s3889_s3 + $0x50] sm:$0xff]  ;;  %v1178_v44 = vld [vmem:[%s3889_s3 + $0x60] sm:$0xff] }
 0x10f   : > { %3976 = vst [vmem:[#allocation22_spill] sm:$0xff] %v3172_v52  ;;  %v978_v56 = vrot.slane %v977_v33, 4  ;;  %v841_v16 = vadd.f32 %v3174_v51, %v3170_v20  ;;  %2508 = vpow2.f32 %v716_v40  ;;  %v653_v10 = vmax.f32 %v651_v38, %v652_v41  ;;  %2321 = vmatprep.subr.bf16.mxu0 %v3143_v43  ;;  %2353 = vmatprep.subr.bf16.mxu1 %v3143_v43 }
 0x110   : > { %v973_v50 = vrot.slane %v3124_v14, 2  ;;  %v796_v24 = vadd.f32 %v795_v61, %v794_v58  ;;  %v742_v45 = vmul.f32 1.442695, %v682_v13  ;;  %v744_v29 = vmul.f32 1.442695, %v683_v3  ;;  %v1179_v13 = vld [vmem:[%s3889_s3 + $0x68] sm:$0xff] }
 0x111   : > { %v979_v30 = vadd.f32 %v978_v56, %v977_v33  ;;  %v842_v22 = vrot.slane %v841_v16, 4  ;;  %v684_v41 = vsub.f32 %v3089_v60, %v653_v10  ;;  %v685_v9 = vsub.f32 %v3080_v23, %v653_v10  ;;  %v2503_v59 = vpop.eup %2502 }
 0x112   : > { %v1010_v54 = vrot.slane %v3063_v27, 1  ;;  %v1022_v55 = vrot.slane %v3132_v39, 2  ;;  %v797_v38 = vrot.slane %v796_v24, 1  ;;  %2510 = vpow2.f32 %v742_v45  ;;  %2323 = vmatpush3.bf16.msra.mxu0 %v3143_v43  ;;  %2355 = vmatpush3.bf16.msra.mxu1 %v3143_v43 }
 0x113   : > { %v843_v61 = vadd.f32 %v842_v22, %v841_v16  ;;  %2512 = vpow2.f32 %v744_v29  ;;  %v746_v58 = vmul.f32 1.442695, %v684_v41  ;;  %2325 = vmatprep.subr.bf16.mxu0 %v3172_v52  ;;  %2357 = vmatprep.subr.bf16.mxu1 %v3172_v52  ;;  %v3199_v60 = vpack.c.bf16 %v1177_v26, %v1176_v8 }
 0x114   : > { %v968_v23 = vrot.slane %v3116_v11, 1  ;;  %v980_v33 = vrot.slane %v979_v30, 2  ;;  %v798_v17 = vadd.f32 %v797_v38, %v796_v24  ;;  %v748_v40 = vmul.f32 1.442695, %v685_v9 }
 0x115   : > { %3977 = vst [vmem:[#allocation23_spill] sm:$0xff] %v3199_v60  ;;  %v3978_v3 = vrot.slane %v3106_v57, 2  ;;  %v974_v16 = vadd.f32 %v973_v50, %v3124_v14  ;;  %v844_v10 = vrot.slane %v843_v61, 2  ;;  %2514 = vpow2.f32 %v746_v58 }
 0x116   : > { %v3213_v8 = vadd.f32 %v1010_v54, %v3063_v27  ;;  %v3217_v24 = vmul.f32 %v2857_v1, %v2952_v21  ;;  %v1023_v45 = vadd.f32 %v1022_v55, %v3132_v39  ;;  %2516 = vrcp.f32 %v798_v17  ;;  %2327 = vmatpush3.bf16.msra.mxu0 %v3172_v52  ;;  %2359 = vmatpush3.bf16.msra.mxu1 %v3172_v52 }
 0x117   : > { %v1016_v56 = vadd.f32 %v3978_v3, %v3106_v57  ;;  %v2505_v29 = vpop.eup %2504  ;;  %v845_v14 = vadd.f32 %v844_v10, %v843_v61  ;;  %2518 = vpow2.f32 %v748_v40  ;;  %2329 = vmatprep.subr.bf16.mxu0 %v3199_v60  ;;  %2361 = vmatprep.subr.bf16.mxu1 %v3199_v60  ;;  %v3225_v27 = vpack.c.bf16 %v1179_v13, %v1178_v44 }
 0x118   : > { %v3227_v21 = vpop.eup %2506  ;;  %v3230_v39 = vadd.f32 %v968_v23, %v3116_v11  ;;  %v981_v50 = vadd.f32 %v980_v33, %v979_v30  ;;  %v3233_v26 = vmul.f32 %v2505_v29, %v3071_v46  ;;  %v3236_v22 = vmul.f32 %v2505_v29, %v3076_v2 }
 0x119   : > { %3979 = vst [vmem:[#allocation24_spill] sm:$0xff] %v3225_v27  ;;  %v3238_v41 = vpop.eup %2508  ;;  %v1017_v9 = vrot.slane %v1016_v56, 1  ;;  %v975_v54 = vrot.slane %v974_v16, 1  ;;  %v3242_v55 = vmul.f32 %v2793_v7, %v3022_v47  ;;  %v846_v38 = vrot.slane %v845_v14, 1 }
 0x11a   : > { %3980 = vst [vmem:[#allocation25_spill] sm:$0xff] %v3236_v22  ;;  %v1024_v61 = vrot.slane %v1023_v45, 1  ;;  %v934_v11 = vmul.f32 %v3233_v26, %v3233_v26  ;;  %v935_v46 = vmul.f32 %v3236_v22, %v3236_v22  ;;  %2331 = vmatpush3.bf16.msra.mxu0 %v3199_v60  ;;  %2520 = vrsqrt.f32 %v2958_v5  ;;  %2363 = vmatpush3.bf16.msra.mxu1 %v3199_v60 }
 0x11b   : > { %3981 = vst [vmem:[#allocation26_spill] sm:$0xff] %v3242_v55  ;;  %v3252_v2 = vmul.f32 %v2793_v7, %v3233_v26  ;;  %v847_v30 = vadd.f32 %v846_v38, %v845_v14  ;;  %v799_v58 = vadd.f32 %v3238_v41, %v3227_v21  ;;  %2333 = vmatprep.subr.bf16.mxu0 %v3225_v27  ;;  %2522 = vrsqrt.f32 %v3011_v53 }
 0x11c   : > { %v3259_v23 = vpop.eup %2510  ;;  %v3263_v33 = vmul.f32 %v2839_v37, %v3032_v31  ;;  %v982_v17 = vrot.slane %v981_v50, 1  ;;  %v1026_v40 = vadd.f32 %v935_v46, %v934_v11  ;;  %v1055_v7 = vmul.f32 %v2503_v59, %v2974_v34  ;;  %2365 = vmatprep.subr.bf16.mxu1 %v3225_v27 }
 0x11d   : > { %3982 = vst [vmem:[#allocation27_spill] sm:$0xff] %v3252_v2  ;;  %v3267_v44 = vpop.eup %2512  ;;  %v3269_v13 = vadd.f32 %v975_v54, %v974_v16  ;;  %v3273_v3 = vmul.f32 %v2857_v1, %v3032_v31  ;;  %2524 = vrcp.f32 %v847_v30  ;;  %v800_v10 = vrot.slane %v799_v58, 4 }
 0x11e   : > { %3983 = vst [vmem:[#allocation28_spill] sm:$0xff] %v3263_v33  ;;  %v3275_v29 = vadd.f32 %v1017_v9, %v1016_v56  ;;  %v1027_v14 = vrot.slane %v1026_v40, 4  ;;  %v848_v38 = vadd.f32 %v3267_v44, %v3259_v23  ;;  %2335 = vmatpush3.bf16.msra.mxu0 %v3225_v27  ;;  %2526 = vrsqrt.f32 %v3230_v39  ;;  %2367 = vmatpush3.bf16.msra.mxu1 %v3225_v27 }
 0x11f   : > { %3984 = vst [vmem:[#allocation29_spill] sm:$0xff] %v3273_v3  ;;  %v3281_v59 = vpop.eup %2514  ;;  %v3283_v16 = vadd.f32 %v1024_v61, %v1023_v45  ;;  %v801_v54 = vadd.f32 %v800_v10, %v799_v58  ;;  %vm1058_vm3 = vcmp.eq.f32.partialorder %v2974_v34, 0.0  ;;  %v3288_v31 = vadd.f32 %v982_v17, %v981_v50 }
 0x120   : > { %3985 = vst [vmem:[#allocation30_spill] sm:$0xff] %v3275_v29  ;;  %v2517_v1 = vpop.eup %2516  ;;  %v849_v56 = vrot.slane %v848_v38, 4  ;;  %v1057_v9 = vsel %vm1056_vm2, %v2974_v34, %v1055_v7  ;;  %v1059_v11 = vand.u32 2147483648, %v2974_v34  ;;  %2528 = vrsqrt.f32 %v3269_v13 }
 0x121   : > { %3986 = vst [vmem:[#allocation31_spill] sm:$0xff] %v3283_v16  ;;  %v3292_v46 = vpop.eup %2518  ;;  %v3295_v45 = vmul.f32 %v2517_v1, %v3130_v62  ;;  %v3298_v61 = vmul.f32 %v2517_v1, %v3138_v0  ;;  %v802_v30 = vrot.slane %v801_v54, 2  ;;  %v1028_v58 = vadd.f32 %v1027_v14, %v1026_v40 }
 0x122   : > { %v850_v10 = vadd.f32 %v849_v56, %v848_v38  ;;  %v855_v50 = vadd.f32 %v3292_v46, %v3281_v59  ;;  %vm1063_vm4 = vcmp.eq.f32.partialorder %v2958_v5, inf  ;;  %v3310_v0 = vsel %vm1058_vm3, %v1059_v11, %v1057_v9 }
 0x123   : > { %v922_v17 = vmul.f32 %v3295_v45, %v3295_v45  ;;  %v923_v62 = vmul.f32 %v3298_v61, %v3298_v61  ;;  %v803_v7 = vadd.f32 %v802_v30, %v801_v54  ;;  %v1066_v14 = vand.u32 2147483648, %v2958_v5 }
 0x124   : > { %v2521_v1 = vpop.eup %2520  ;;  %v851_v57 = vrot.slane %v850_v10, 2  ;;  %v856_v40 = vrot.slane %v855_v50, 4  ;;  %2530 = vrsqrt.f32 %v3288_v31  ;;  %vm1065_vm5 = vcmp.eq.f32.partialorder %v2958_v5, 0.0 }
 0x125   : > { %v2523_v38 = vpop.eup %2522  ;;  %v984_v56 = vadd.f32 %v923_v62, %v922_v17  ;;  %v804_v2 = vrot.slane %v803_v7, 1  ;;  %vm1070_vm6 = vcmp.eq.f32.partialorder %v3011_v53, inf  ;;  %v1073_v54 = vand.u32 2147483648, %v3011_v53 }
 0x126   : > { %v1029_v30 = vrot.slane %v1028_v58, 2  ;;  %v852_v34 = vadd.f32 %v851_v57, %v850_v10  ;;  %v857_v9 = vadd.f32 %v856_v40, %v855_v50  ;;  %vm1072_vm7 = vcmp.eq.f32.partialorder %v3011_v53, 0.0 }
 0x127   : > { %vm1077_vm8 = vcmp.eq.f32.partialorder %v3230_v39, inf  ;;  %v1080_v11 = vand.u32 2147483648, %v3230_v39  ;;  %v2525_v32 = vpop.eup %2524  ;;  %v985_v27 = vrot.slane %v984_v56, 4  ;;  %v805_v60 = vadd.f32 %v804_v2, %v803_v7 }
 0x128   : > { %v1062_v17 = vmul.f32 %v2521_v1, %v2958_v5  ;;  %v2527_v52 = vpop.eup %2526  ;;  %v3323_v55 = vmul.f32 %v2525_v32, %v3170_v20  ;;  %v3326_v57 = vmul.f32 %v2525_v32, %v3174_v51  ;;  %v853_v10 = vrot.slane %v852_v34, 1 }
 0x129   : > { %v1069_v50 = vmul.f32 %v2523_v38, %v3011_v53  ;;  %v986_v40 = vadd.f32 %v985_v27, %v984_v56  ;;  %2532 = vrcp.f32 %v805_v60  ;;  %v858_v43 = vrot.slane %v857_v9, 2 }
 0x12a   : > { %3987 = vst [vmem:[#allocation32_spill] sm:$0xff] %v3323_v55  ;;  %3988 = vst [vmem:[#allocation33_spill] sm:$0xff] %v3326_v57  ;;  %vm1079_vm9 = vcmp.eq.f32.partialorder %v3230_v39, 0.0  ;;  %vm1084_vm10 = vcmp.eq.f32.partialorder %v3269_v13, inf  ;;  %v1094_v2 = vand.u32 2147483648, %v3288_v31  ;;  %v3332_v7 = vadd.f32 %v1029_v30, %v1028_v58  ;;  %v2529_v1 = vpop.eup %2528 }
 0x12b   : > { %v936_v20 = vmul.f32 %v3323_v55, %v3323_v55  ;;  %v937_v32 = vmul.f32 %v3326_v57, %v3326_v57  ;;  %v854_v51 = vadd.f32 %v853_v10, %v852_v34  ;;  %v987_v38 = vrot.slane %v986_v40, 2 }
 0x12c   : > { %v859_v27 = vadd.f32 %v858_v43, %v857_v9  ;;  %v1064_v60 = vsel %vm1063_vm4, %v2958_v5, %v1062_v17  ;;  %v1076_v56 = vmul.f32 %v2527_v52, %v3230_v39  ;;  %v1071_v58 = vsel %vm1070_vm6, %v3011_v53, %v1069_v50 }
 0x12d   : > { %v1033_v62 = vadd.f32 %v937_v32, %v936_v20  ;;  %2534 = vrcp.f32 %v854_v51  ;;  %vm1086_vm11 = vcmp.eq.f32.partialorder %v3269_v13, 0.0  ;;  %vm1091_vm12 = vcmp.eq.f32.partialorder %v3288_v31, inf }
 0x12e   : > { %v1189_v30 = vmul.f32 %v2848_v49, %v2832_v48  ;;  %v988_v43 = vadd.f32 %v987_v38, %v986_v40  ;;  %v860_v34 = vrot.slane %v859_v27, 1  ;;  %v1191_v9 = vmul.f32 %v2848_v49, %v2984_v28  ;;  %v2531_v17 = vpop.eup %2530 }
 0x12f   : > { %v1192_v52 = vmul.f32 %v2839_v37, %v3022_v47  ;;  %v3356_v50 = vsel %vm1065_vm5, %v1066_v14, %v1064_v60  ;;  %v1083_v20 = vmul.f32 %v2529_v1, %v3269_v13  ;;  %v1193_v32 = vmul.f32 %v2848_v49, %v3029_v18 }
 0x130   : > { %v989_v40 = vrot.slane %v988_v43, 1  ;;  %v861_v51 = vadd.f32 %v860_v34, %v859_v27  ;;  %v3363_v38 = vsel %vm1072_vm7, %v1073_v54, %v1071_v58  ;;  %v1078_v37 = vsel %vm1077_vm8, %v3230_v39, %v1076_v56 }
 0x131   : > { %vm1093_vm13 = vcmp.eq.f32.partialorder %v3288_v31, 0.0  ;;  %v1034_v5 = vrot.slane %v1033_v62, 4  ;;  %v1217_v14 = vrot.slane %v2941_v25, 4  ;;  %v1224_v1 = vrot.slane %v2904_v6, 4 }
 0x132   : > { %v1230_v49 = vadd.f32 %v1189_v30, %v2949_v19  ;;  %2536 = vrcp.f32 %v861_v51  ;;  %v3372_v27 = vadd.f32 %v989_v40, %v988_v43  ;;  %v1090_v53 = vmul.f32 %v2531_v17, %v3288_v31  ;;  %v3385_v19 = vld [vmem:[%s2786_s30] sm:$0xff] }
 0x133   : > { %v1237_v54 = vadd.f32 %v1191_v9, %v3048_v42  ;;  %v3378_v60 = vsel %vm1079_vm9, %v1080_v11, %v1078_v37  ;;  %v1085_v56 = vsel %vm1084_vm10, %v3269_v13, %v1083_v20  ;;  %v1244_v34 = vadd.f32 %v1193_v32, %v1192_v52  ;;  %v2533_v10 = vpop.eup %2532  ;;  %3989 = vst [vmem:[#allocation34_spill] sm:$0xff] %v3385_v19  ;;  %v3398_v52 = vld [vmem:[%s2786_s30 + $0x8] sm:$0xff] }
 0x134   : > { %v1231_v58 = vrot.slane %v1230_v49, 4  ;;  %2538 = vrsqrt.f32 %v3372_v27  ;;  %v1194_v30 = vmul.f32 %v3385_v19, %v3149_v4  ;;  %v1218_v42 = vadd.f32 %v1217_v14, %v2941_v25 }
 0x135   : > { %v1225_v39 = vadd.f32 %v1224_v1, %v2904_v6  ;;  %v1035_v11 = vadd.f32 %v1034_v5, %v1033_v62  ;;  %v3392_v43 = vmul.f32 %v2533_v10, %v3227_v21  ;;  %v3395_v9 = vmul.f32 %v2533_v10, %v3238_v41 }
 0x136   : > { %v1195_v17 = vmul.f32 %v3398_v52, %v3152_v35  ;;  %v3990_v20 = vand.u32 2147483648, %v3269_v13  ;;  %v1092_v6 = vsel %vm1091_vm12, %v3288_v31, %v1090_v53  ;;  %v1232_v25 = vadd.f32 %v1231_v58, %v1230_v49 }
 0x137   : > { %v1238_v21 = vrot.slane %v1237_v54, 4  ;;  %v2535_v62 = vpop.eup %2534  ;;  %v924_v41 = vmul.f32 %v3392_v43, %v3392_v43  ;;  %v925_v10 = vmul.f32 %v3395_v9, %v3395_v9  ;;  %v1196_v40 = vmul.f32 %v3385_v19, %v3295_v45 }
 0x138   : > { %v3406_v32 = vsel %vm1086_vm11, %v3990_v20, %v1085_v56  ;;  %v1245_v51 = vrot.slane %v1244_v34, 4  ;;  %v3418_v13 = vmul.f32 %v2535_v62, %v3259_v23  ;;  %v3421_v37 = vmul.f32 %v2535_v62, %v3267_v44 }
 0x139   : > { %3991 = vst [vmem:[#allocation35_spill] sm:$0xff] %v3406_v32  ;;  %v1219_v5 = vrot.slane %v1218_v42, 2  ;;  %v1226_v14 = vrot.slane %v1225_v39, 2  ;;  %v1036_v1 = vrot.slane %v1035_v11, 2  ;;  %v991_v49 = vadd.f32 %v925_v10, %v924_v41 }
 0x13a   : > { %3992 = vst [vmem:[#allocation36_spill] sm:$0xff] %v3418_v13  ;;  %3993 = vst [vmem:[#allocation37_spill] sm:$0xff] %v3421_v37  ;;  %v3427_v53 = vsel %vm1093_vm13, %v1094_v2, %v1092_v6  ;;  %v1197_v56 = vmul.f32 %v3398_v52, %v3298_v61  ;;  %v938_v23 = vmul.f32 %v3418_v13, %v3418_v13  ;;  %v1233_v58 = vrot.slane %v1232_v25, 2 }
 0x13b   : > { %3994 = vst [vmem:[#allocation38_spill] sm:$0xff] %v3427_v53  ;;  %v939_v44 = vmul.f32 %v3421_v37, %v3421_v37  ;;  %v1239_v20 = vadd.f32 %v1238_v21, %v1237_v54  ;;  %v992_v62 = vrot.slane %v991_v49, 4  ;;  %vm1098_vm14 = vcmp.eq.f32.partialorder %v3372_v27, inf }
 0x13c   : > { %v1101_v41 = vand.u32 2147483648, %v3372_v27  ;;  %v1198_v31 = vmul.f32 %v3385_v19, %v3392_v43  ;;  %v1246_v2 = vadd.f32 %v1245_v51, %v1244_v34  ;;  %v2537_v6 = vpop.eup %2536  ;;  %v1220_v63 = vadd.f32 %v1219_v5, %v1218_v42 }
 0x13d   : > { %v1040_v10 = vadd.f32 %v939_v44, %v938_v23  ;;  %v1227_v3 = vadd.f32 %v1226_v14, %v1225_v39  ;;  %v1240_v33 = vrot.slane %v1239_v20, 2  ;;  %v993_v13 = vadd.f32 %v992_v62, %v991_v49 }
 0x13e   : > { %v3440_v57 = vmul.f32 %v2537_v6, %v3281_v59  ;;  %v3443_v54 = vmul.f32 %v2537_v6, %v3292_v46  ;;  %v1251_v21 = vadd.f32 %v1195_v17, %v1194_v30  ;;  %v2539_v37 = vpop.eup %2538  ;;  %v1234_v22 = vadd.f32 %v1233_v58, %v1232_v25 }
 0x13f   : > { %v1041_v55 = vrot.slane %v1040_v10, 4  ;;  %v1241_v16 = vadd.f32 %v1240_v33, %v1239_v20  ;;  %v1247_v29 = vrot.slane %v1246_v2, 2  ;;  %v994_v19 = vrot.slane %v993_v13, 2 }
 0x140   : > { %3995 = vst [vmem:[#allocation39_spill] sm:$0xff] %v3443_v54  ;;  %v940_v34 = vmul.f32 %v3440_v57, %v3440_v57  ;;  %v941_v42 = vmul.f32 %v3443_v54, %v3443_v54  ;;  %vm1100_vm15 = vcmp.eq.f32.partialorder %v3372_v27, 0.0  ;;  %v1199_v59 = vmul.f32 %v3398_v52, %v3395_v9 }
 0x141   : > { %v1097_v46 = vmul.f32 %v2539_v37, %v3372_v27  ;;  %v1221_v30 = vrot.slane %v1220_v63, 1  ;;  %v1228_v39 = vrot.slane %v1227_v3, 1  ;;  %v1248_v17 = vadd.f32 %v1247_v29, %v1246_v2 }
 0x142   : > { %v3453_v25 = vadd.f32 %v1036_v1, %v1035_v11  ;;  %v995_v33 = vadd.f32 %v994_v19, %v993_v13  ;;  %v1047_v51 = vadd.f32 %v941_v42, %v940_v34  ;;  %v1252_v5 = vrot.slane %v1251_v21, 4 }
 0x143   : > { %v3455_v14 = vadd.f32 %v1041_v55, %v1040_v10  ;;  %v1235_v49 = vrot.slane %v1234_v22, 1  ;;  %v1242_v23 = vrot.slane %v1241_v16, 1  ;;  %v1249_v44 = vrot.slane %v1248_v17, 1 }
 0x144   : > { %v1048_v58 = vrot.slane %v1047_v51, 4  ;;  %v996_v20 = vrot.slane %v995_v33, 1  ;;  %v1253_v62 = vadd.f32 %v1252_v5, %v1251_v21  ;;  %v1258_v6 = vadd.f32 %v1197_v56, %v1196_v40 }
 0x145   : > { %v1099_v37 = vsel %vm1098_vm14, %v3372_v27, %v1097_v46  ;;  %v1222_v54 = vadd.f32 %v1221_v30, %v1220_v63  ;;  %v1229_v29 = vadd.f32 %v1228_v39, %v1227_v3  ;;  %v1265_v11 = vadd.f32 %v1199_v59, %v1198_v31 }
 0x146   : > { %v3460_v1 = vadd.f32 %v1048_v58, %v1047_v51  ;;  %v3462_v19 = vadd.f32 %v996_v20, %v995_v33  ;;  %v1254_v55 = vrot.slane %v1253_v62, 2  ;;  %v1259_v13 = vrot.slane %v1258_v6, 4 }
 0x147   : > { %v1043_v2 = vrot.slane %v3455_v14, 2  ;;  %v1236_v10 = vadd.f32 %v1235_v49, %v1234_v22  ;;  %v1243_v34 = vadd.f32 %v1242_v23, %v1241_v16  ;;  %v1266_v42 = vrot.slane %v1265_v11, 4 }
 0x148   : > { %2540 = vrsqrt.f32 %v3462_v19  ;;  %v1250_v40 = vadd.f32 %v1249_v44, %v1248_v17  ;;  %v1328_v56 = vmul.f32 %v1222_v54, %v3310_v0  ;;  %v1329_v63 = vmul.f32 %v1229_v29, %v3356_v50 }
 0x149   : > { %v3470_v3 = vsel %vm1100_vm15, %v1101_v41, %v1099_v37  ;;  %v1255_v31 = vadd.f32 %v1254_v55, %v1253_v62  ;;  %v1260_v21 = vadd.f32 %v1259_v13, %v1258_v6  ;;  %v1330_v59 = vmul.f32 %v1236_v10, %v3363_v38  ;;  %v3485_v6 = vld [vmem:[%s2786_s30 + $0x18] sm:$0xff] }
 0x14a   : > { %3996 = vst [vmem:[#allocation40_spill] sm:$0xff] %v3470_v3  ;;  %v1050_v46 = vrot.slane %v3460_v1, 2  ;;  %v1267_v22 = vadd.f32 %v1266_v42, %v1265_v11  ;;  %v1331_v16 = vmul.f32 %v1243_v34, %v3378_v60  ;;  %v1332_v30 = vmul.f32 %v1250_v40, %v3406_v32  ;;  %v3492_v11 = vld [vmem:[%s2786_s30 + $0x10] sm:$0xff] }
 0x14b   : > { %v1256_v39 = vrot.slane %v1255_v31, 1  ;;  %v1261_v17 = vrot.slane %v1260_v21, 2  ;;  %vm1105_vm2 = vcmp.eq.f32.partialorder %v3462_v19, inf  ;;  %v1108_v27 = vand.u32 2147483648, %v3462_v19 }
 0x14c   : > { %v1268_v41 = vrot.slane %v1267_v22, 2  ;;  %v1361_v54 = vsel %vm1360_vm0, %v1329_v63, %v1328_v56  ;;  %vm3948_vm3 = vcmask 1043459   ;;  %vm1107_vm4 = vcmp.eq.f32.partialorder %v3462_v19, 0.0 }
 0x14d   : > { %v1257_v33 = vadd.f32 %v1256_v39, %v1255_v31  ;;  %v1262_v51 = vadd.f32 %v1261_v17, %v1260_v21  ;;  %v1363_v5 = vsel %vm1362_vm1, %v1330_v59, %v1361_v54  ;;  %vm3947_vm5 = vcmask 1044484  }
 0x14e   : > { %v1269_v49 = vadd.f32 %v1268_v41, %v1267_v22  ;;  %v1365_v23 = vsel %vm3948_vm3, %v1331_v16, %v1363_v5  ;;  %vm3946_vm6 = vcmask 1045509   ;;  %vm3945_vm7 = vcmask 1046534  }
 0x14f   : > { %v1263_v44 = vrot.slane %v1262_v51, 1  ;;  %v1333_v58 = vmul.f32 %v1257_v33, %v3427_v53  ;;  %v1367_v20 = vsel %vm3947_vm5, %v1332_v30, %v1365_v23  ;;  %vm3944_vm8 = vcmask 1047559  }
 0x150   : > { %v1270_v62 = vrot.slane %v1269_v49, 1  ;;  %v1468_v37 = vmul.f32 %v3485_v6, %v2832_v48  ;;  %v1470_v29 = vmul.f32 %v3485_v6, %v2984_v28  ;;  %v1471_v55 = vmul.f32 %v3492_v11, %v3022_v47 }
 0x151   : > { %v1264_v13 = vadd.f32 %v1263_v44, %v1262_v51  ;;  %v1369_v10 = vsel %vm3946_vm6, %v1333_v58, %v1367_v20  ;;  %v1472_v34 = vmul.f32 %v3485_v6, %v3029_v18  ;;  %v1473_v42 = vmul.f32 %v3492_v11, %v3149_v4 }
 0x152   : > { %v2541_v40 = vpop.eup %2540  ;;  %v1271_v56 = vadd.f32 %v1270_v62, %v1269_v49  ;;  %v1474_v48 = vmul.f32 %v3485_v6, %v3152_v35  ;;  %v1475_v63 = vmul.f32 %v3492_v11, %v3295_v45  ;;  %v1476_v47 = vmul.f32 %v3485_v6, %v3298_v61 }
 0x153   : > { %v1104_v31 = vmul.f32 %v2541_v40, %v3462_v19  ;;  %v1334_v21 = vmul.f32 %v1264_v13, %v3470_v3  ;;  %v1477_v59 = vmul.f32 %v3492_v11, %v3392_v43  ;;  %v1478_v22 = vmul.f32 %v3485_v6, %v3395_v9 }
 0x154   : > { %v1496_v16 = vrot.slane %v2943_v12, 4  ;;  %v1503_v30 = vrot.slane %v2908_v15, 4  ;;  %v1509_v39 = vadd.f32 %v1468_v37, %v2963_v36  ;;  %v1516_v17 = vadd.f32 %v1470_v29, %v3217_v24 }
 0x155   : > { %v1106_v41 = vsel %vm1105_vm2, %v3462_v19, %v1104_v31  ;;  %v1371_v54 = vsel %vm3945_vm7, %v1334_v21, %v1369_v10  ;;  %v1523_v33 = vadd.f32 %v1472_v34, %v1471_v55  ;;  %v1530_v51 = vadd.f32 %v1474_v48, %v1473_v42 }
 0x156   : > { %v3523_v5 = vsel %vm1107_vm4, %v1108_v27, %v1106_v41  ;;  %v1497_v49 = vadd.f32 %v1496_v16, %v2943_v12  ;;  %v1504_v23 = vadd.f32 %v1503_v30, %v2908_v15  ;;  %v1510_v44 = vrot.slane %v1509_v39, 4 }
 0x157   : > { %3997 = vst [vmem:[#allocation41_spill] sm:$0xff] %v3523_v5  ;;  %v1335_v36 = vmul.f32 %v1271_v56, %v3523_v5  ;;  %v1517_v24 = vrot.slane %v1516_v17, 4  ;;  %v1524_v58 = vrot.slane %v1523_v33, 4  ;;  %v1531_v20 = vrot.slane %v1530_v51, 4 }
 0x158   : > { %v1498_v62 = vrot.slane %v1497_v49, 2  ;;  %v1505_v37 = vrot.slane %v1504_v23, 2  ;;  %v1511_v29 = vadd.f32 %v1510_v44, %v1509_v39  ;;  %v1537_v13 = vadd.f32 %v1476_v47, %v1475_v63 }
 0x159   : > { %v1373_v55 = vsel %vm3944_vm8, %v1335_v36, %v1371_v54  ;;  %v1518_v10 = vadd.f32 %v1517_v24, %v1516_v17  ;;  %v1525_v19 = vadd.f32 %v1524_v58, %v1523_v33  ;;  %v1532_v27 = vadd.f32 %v1531_v20, %v1530_v51 }
 0x15a   : > { %2235 = vmatprep.mubr.f32.mxu0 %v1373_v55  ;;  %v1499_v34 = vadd.f32 %v1498_v62, %v1497_v49  ;;  %v1506_v12 = vadd.f32 %v1505_v37, %v1504_v23  ;;  %v1512_v42 = vrot.slane %v1511_v29, 2  ;;  %v1538_v15 = vrot.slane %v1537_v13, 4 }
 0x15b   : > { %v1519_v40 = vrot.slane %v1518_v10, 2  ;;  %v1526_v48 = vrot.slane %v1525_v19, 2  ;;  %v1533_v56 = vrot.slane %v1532_v27, 2  ;;  %v1544_v31 = vadd.f32 %v1478_v22, %v1477_v59  ;;  %v1180_v59 = vld [vmem:[%s3889_s3 + $0x70] sm:$0xff]  ;;  %v1181_v22 = vld [vmem:[%s3889_s3 + $0x78] sm:$0xff] }
 0x15c   : > { %v1500_v21 = vrot.slane %v1499_v34, 1  ;;  %v1507_v16 = vrot.slane %v1506_v12, 1  ;;  %v1513_v30 = vadd.f32 %v1512_v42, %v1511_v29  ;;  %v1539_v41 = vadd.f32 %v1538_v15, %v1537_v13 }
 0x15d   : > { %v1520_v39 = vadd.f32 %v1519_v40, %v1518_v10  ;;  %v1527_v63 = vadd.f32 %v1526_v48, %v1525_v19  ;;  %v1534_v47 = vadd.f32 %v1533_v56, %v1532_v27  ;;  %v1545_v54 = vrot.slane %v1544_v31, 4  ;;  %v3999_v48 = vld [vmem:[#allocation14_spill] sm:$0xff] }
 0x15e   : > { %v1501_v17 = vadd.f32 %v1500_v21, %v1499_v34  ;;  %v1508_v33 = vadd.f32 %v1507_v16, %v1506_v12  ;;  %v1514_v51 = vrot.slane %v1513_v30, 1  ;;  %v1540_v44 = vrot.slane %v1539_v41, 2 }
 0x15f   : > { %v1521_v49 = vrot.slane %v1520_v39, 1  ;;  %v1528_v23 = vrot.slane %v1527_v63, 1  ;;  %v1535_v36 = vrot.slane %v1534_v47, 1  ;;  %v1546_v24 = vadd.f32 %v1545_v54, %v1544_v31  ;;  %v4002_v54 = vld [vmem:[#allocation34_spill] sm:$0xff] }
 0x160   : > { %v1044_v58 = vadd.f32 %v1043_v2, %v3455_v14  ;;  %v1051_v20 = vadd.f32 %v1050_v46, %v3460_v1  ;;  %v1515_v62 = vadd.f32 %v1514_v51, %v1513_v30  ;;  %v1541_v37 = vadd.f32 %v1540_v44, %v1539_v41 }
 0x161   : > { %v1522_v29 = vadd.f32 %v1521_v49, %v1520_v39  ;;  %v1547_v13 = vrot.slane %v1546_v24, 2  ;;  %v1607_v55 = vmul.f32 %v1501_v17, %v3310_v0  ;;  %v1608_v10 = vmul.f32 %v1508_v33, %v3356_v50 }
 0x162   : > { %v1529_v19 = vadd.f32 %v1528_v23, %v1527_v63  ;;  %v1542_v27 = vrot.slane %v1541_v37, 1  ;;  %v1609_v34 = vmul.f32 %v1515_v62, %v3363_v38  ;;  %v3544_v12 = vpack.c.bf16 %v1181_v22, %v1180_v59 }
 0x163   : > { %v1038_v14 = vrot.slane %v3453_v25, 1  ;;  %v1536_v2 = vadd.f32 %v1535_v36, %v1534_v47  ;;  %v1548_v42 = vadd.f32 %v1547_v13, %v1546_v24  ;;  %v1610_v1 = vmul.f32 %v1522_v29, %v3378_v60  ;;  %v4001_v47 = vld [vmem:[#allocation18_spill] sm:$0xff] }
 0x164   : > { %3998 = vst [vmem:[#allocation42_spill] sm:$0xff] %v3544_v12  ;;  %v1045_v46 = vrot.slane %v1044_v58, 1  ;;  %v1543_v15 = vadd.f32 %v1542_v27, %v1541_v37  ;;  %v1611_v40 = vmul.f32 %v1529_v19, %v3406_v32  ;;  %2337 = vmatprep.subr.bf16.mxu0 %v3544_v12  ;;  %2369 = vmatprep.subr.bf16.mxu1 %v3544_v12  ;;  %2542 = vrsqrt.f32 %v3999_v48  ;;  %v4003_v36 = vld [vmem:[#allocation30_spill] sm:$0xff] }
 0x165   : > { %v1052_v56 = vrot.slane %v1051_v20, 1  ;;  %v1549_v31 = vrot.slane %v1548_v42, 1  ;;  %v1612_v21 = vmul.f32 %v1536_v2, %v3427_v53  ;;  %v1639_v16 = vsel %vm1360_vm0, %v1608_v10, %v1607_v55  ;;  %2339 = vmatpush3.bf16.msra.mxu0 %v3544_v12  ;;  %2371 = vmatpush3.bf16.msra.mxu1 %v3544_v12  ;;  %v4016_v19 = vld [vmem:[#allocation10_spill] sm:$0xff] }
 0x166   : > { %v4000_v30 = vrot.slane %v3332_v7, 1  ;;  %v1613_v39 = vmul.f32 %v1543_v15, %v3470_v3  ;;  %v1640_v63 = vsel %vm1362_vm1, %v1609_v34, %v1639_v16  ;;  %2373 = vmatprep.subr.bf16.mxu0 %v4001_v47  ;;  %2544 = vrsqrt.f32 %v3213_v8 }
 0x167   : > { %v3567_v17 = vmul.f32 %v4002_v54, %v3233_v26  ;;  %v3571_v33 = vmul.f32 %v3492_v11, %v3233_v26  ;;  %v1550_v51 = vadd.f32 %v1549_v31, %v1548_v42  ;;  %v3575_v44 = vadd.f32 %v1038_v14, %v3453_v25  ;;  %v4004_v26 = vld [vmem:[#allocation31_spill] sm:$0xff]  ;;  %v4006_v42 = vld [vmem:[#allocation25_spill] sm:$0xff] }
 0x168   : > { %v3559_v41 = vadd.f32 %v4000_v30, %v3332_v7  ;;  %v1641_v7 = vsel %vm3948_vm3, %v1610_v1, %v1640_v63  ;;  %v3577_v49 = vadd.f32 %v1045_v46, %v1044_v58  ;;  %2546 = vrsqrt.f32 %v4003_v36  ;;  %v4005_v14 = vld [vmem:[#allocation15_spill] sm:$0xff]  ;;  %v4007_v46 = vld [vmem:[#allocation32_spill] sm:$0xff]  ;;  %v4010_v30 = vld [vmem:[#allocation37_spill] sm:$0xff] }
 0x169   : > { %v1642_v23 = vsel %vm3947_vm5, %v1611_v40, %v1641_v7  ;;  %v1614_v24 = vmul.f32 %v1550_v51, %v3523_v5  ;;  %v3583_v22 = vadd.f32 %v1052_v56, %v1051_v20  ;;  %2548 = vrsqrt.f32 %v4004_v26  ;;  %v4008_v56 = vld [vmem:[#allocation33_spill] sm:$0xff] }
 0x16a   : > { %v1643_v59 = vsel %vm3946_vm6, %v1612_v21, %v1642_v23  ;;  %vm1112_vm9 = vcmp.eq.f32.partialorder %v3999_v48, inf  ;;  %vm1114_vm10 = vcmp.eq.f32.partialorder %v3999_v48, 0.0  ;;  %2550 = vrsqrt.f32 %v3559_v41  ;;  %v4009_v21 = vld [vmem:[#allocation36_spill] sm:$0xff]  ;;  %v4011_v23 = vld [vmem:[#allocation39_spill] sm:$0xff] }
 0x16b   : > { %v1644_v62 = vsel %vm3945_vm7, %v1613_v39, %v1643_v59  ;;  %v1115_v58 = vand.u32 2147483648, %v3999_v48  ;;  %vm1119_vm11 = vcmp.eq.f32.partialorder %v3213_v8, inf  ;;  %vm1121_vm12 = vcmp.eq.f32.partialorder %v3213_v8, 0.0  ;;  %v4012_v59 = vld [vmem:[#allocation5_spill] sm:$0xff] }
 0x16c   : > { %v1645_v25 = vsel %vm3944_vm8, %v1614_v24, %v1644_v62  ;;  %v1122_v20 = vand.u32 2147483648, %v3213_v8  ;;  %vm1126_vm13 = vcmp.eq.f32.partialorder %v4003_v36, inf  ;;  %v1129_v37 = vand.u32 2147483648, %v4003_v36 }
 0x16d   : > { %2270 = vmatprep.mubr.f32.mxu1 %v1645_v25  ;;  %2552 = vrsqrt.f32 %v3575_v44  ;;  %vm1128_vm14 = vcmp.eq.f32.partialorder %v4003_v36, 0.0  ;;  %vm1133_vm15 = vcmp.eq.f32.partialorder %v4004_v26, inf  ;;  %v1136_v29 = vand.u32 2147483648, %v4004_v26 }
 0x16e   : > { %v1143_v13 = vand.u32 2147483648, %v3559_v41  ;;  %2554 = vrsqrt.f32 %v3577_v49  ;;  %v2543_v55 = vpop.eup %2542  ;;  %vm1135_vm2 = vcmp.eq.f32.partialorder %v4004_v26, 0.0  ;;  %vm1140_vm4 = vcmp.eq.f32.partialorder %v3559_v41, inf }
 0x16f   : > { %2556 = vrsqrt.f32 %v3583_v22  ;;  %v1111_v34 = vmul.f32 %v2543_v55, %v3999_v48  ;;  %vm1142_vm8 = vcmp.eq.f32.partialorder %v3559_v41, 0.0  ;;  %v1207_v2 = vmul.f32 %v3398_v52, %v4005_v14 }
 0x170   : > { %v1209_v1 = vmul.f32 %v3398_v52, %v4006_v42  ;;  %v3617_v15 = vmul.f32 %v4002_v54, %v4007_v46  ;;  %v2545_v40 = vpop.eup %2544  ;;  %vm1147_vm7 = vcmp.eq.f32.partialorder %v3575_v44, inf  ;;  %v1211_v31 = vmul.f32 %v3398_v52, %v4008_v56 }
 0x171   : > { %v1212_v16 = vmul.f32 %v4002_v54, %v4009_v21  ;;  %v1213_v39 = vmul.f32 %v3398_v52, %v4010_v30  ;;  %v1214_v63 = vmul.f32 %v4002_v54, %v3440_v57  ;;  %v1113_v51 = vsel %vm1112_vm9, %v3999_v48, %v1111_v34  ;;  %v4014_v34 = vld [vmem:[#allocation7_spill] sm:$0xff] }
 0x172   : > { %v1118_v7 = vmul.f32 %v2545_v40, %v3213_v8  ;;  %vm1149_vm6 = vcmp.eq.f32.partialorder %v3575_v44, 0.0  ;;  %vm1154_vm5 = vcmp.eq.f32.partialorder %v3577_v49, inf  ;;  %v1215_v24 = vmul.f32 %v3398_v52, %v4011_v23  ;;  %v2547_v55 = vpop.eup %2546  ;;  %v4017_v52 = vld [vmem:[#allocation28_spill] sm:$0xff] }
 0x173   : > { %v4013_v62 = vrot.slane %v4012_v59, 4  ;;  %v3641_v54 = vsel %vm1114_vm10, %v1115_v58, %v1113_v51  ;;  %vm1156_vm9 = vcmp.eq.f32.partialorder %v3577_v49, 0.0  ;;  %vm1161_vm3 = vcmp.eq.f32.partialorder %v3583_v22, inf  ;;  %v2549_v3 = vpop.eup %2548 }
 0x174   : > { %v4015_v40 = vrot.slane %v4014_v34, 4  ;;  %v1287_v10 = vrot.slane %v4016_v19, 4  ;;  %v1293_v5 = vadd.f32 %v1207_v2, %v4017_v52  ;;  %v1125_v48 = vmul.f32 %v2547_v55, %v4003_v36 }
 0x175   : > { %v1274_v25 = vadd.f32 %v4013_v62, %v4012_v59  ;;  %v1120_v59 = vsel %vm1119_vm11, %v3213_v8, %v1118_v7  ;;  %vm1163_vm10 = vcmp.eq.f32.partialorder %v3583_v22, 0.0  ;;  %v1300_v51 = vadd.f32 %v1209_v1, %v3567_v17  ;;  %v2551_v62 = vpop.eup %2550 }
 0x176   : > { %v1281_v27 = vadd.f32 %v4015_v40, %v4014_v34  ;;  %v3658_v34 = vsel %vm1121_vm12, %v1122_v20, %v1120_v59  ;;  %v1132_v40 = vmul.f32 %v2549_v3, %v4004_v26  ;;  %v1288_v52 = vadd.f32 %v1287_v10, %v4016_v19 }
 0x177   : > { %v1275_v58 = vrot.slane %v1274_v25, 2  ;;  %v1127_v7 = vsel %vm1126_vm13, %v4003_v36, %v1125_v48  ;;  %v1139_v55 = vmul.f32 %v2551_v62, %v3559_v41  ;;  %v1294_v32 = vrot.slane %v1293_v5, 4  ;;  %v2553_v12 = vpop.eup %2552 }
 0x178   : > { %v1282_v2 = vrot.slane %v1281_v27, 2  ;;  %v3668_v17 = vsel %vm1128_vm14, %v1129_v37, %v1127_v7  ;;  %v1134_v8 = vsel %vm1133_vm15, %v4004_v26, %v1132_v40  ;;  %v1289_v20 = vrot.slane %v1288_v52, 2  ;;  %v2555_v10 = vpop.eup %2554 }
 0x179   : > { %v1276_v53 = vadd.f32 %v1275_v58, %v1274_v25  ;;  %v3675_v19 = vsel %vm1135_vm2, %v1136_v29, %v1134_v8  ;;  %v1141_v1 = vsel %vm1140_vm4, %v3559_v41, %v1139_v55  ;;  %v1146_v25 = vmul.f32 %v2553_v12, %v3575_v44  ;;  %v2557_v37 = vpop.eup %2556 }
 0x17a   : > { %v1283_v3 = vadd.f32 %v1282_v2, %v1281_v27  ;;  %v3683_v59 = vsel %vm1142_vm8, %v1143_v13, %v1141_v1  ;;  %v1153_v27 = vmul.f32 %v2555_v10, %v3577_v49  ;;  %v1290_v58 = vadd.f32 %v1289_v20, %v1288_v52 }
 0x17b   : > { %v1277_v36 = vrot.slane %v1276_v53, 1  ;;  %v1148_v26 = vsel %vm1147_vm7, %v3575_v44, %v1146_v25  ;;  %v1160_v29 = vmul.f32 %v2557_v37, %v3583_v22  ;;  %v1295_v40 = vadd.f32 %v1294_v32, %v1293_v5 }
 0x17c   : > { %v1284_v48 = vrot.slane %v1283_v3, 1  ;;  %v4018_v12 = vand.u32 2147483648, %v3575_v44  ;;  %v1155_v41 = vsel %vm1154_vm5, %v3577_v49, %v1153_v27  ;;  %v1291_v52 = vrot.slane %v1290_v58, 1 }
 0x17d   : > { %v1278_v62 = vadd.f32 %v1277_v36, %v1276_v53  ;;  %v4019_v7 = vand.u32 2147483648, %v3577_v49  ;;  %v1162_v32 = vsel %vm1161_vm3, %v3583_v22, %v1160_v29  ;;  %v1296_v53 = vrot.slane %v1295_v40, 2 }
 0x17e   : > { %v3694_v2 = vsel %vm1149_vm6, %v4018_v12, %v1148_v26  ;;  %v1285_v13 = vadd.f32 %v1284_v48, %v1283_v3  ;;  %v1301_v5 = vrot.slane %v1300_v51, 4  ;;  %v4020_v44 = vand.u32 2147483648, %v3583_v22 }
 0x17f   : > { %v3703_v55 = vsel %vm1156_vm9, %v4019_v7, %v1155_v41  ;;  %v1292_v3 = vadd.f32 %v1291_v52, %v1290_v58  ;;  %v1307_v20 = vadd.f32 %v1211_v31, %v3617_v15  ;;  %v1314_v10 = vadd.f32 %v1213_v39, %v1212_v16 }
 0x180   : > { %v3712_v8 = vsel %vm1163_vm10, %v4020_v44, %v1162_v32  ;;  %v1297_v1 = vadd.f32 %v1296_v53, %v1295_v40  ;;  %v1302_v49 = vadd.f32 %v1301_v5, %v1300_v51  ;;  %v1321_v25 = vadd.f32 %v1215_v24, %v1214_v63 }
 0x181   : > { %v1336_v36 = vmul.f32 %v1278_v62, %v3641_v54  ;;  %v1308_v37 = vrot.slane %v1307_v20, 4  ;;  %v1315_v27 = vrot.slane %v1314_v10, 4  ;;  %v1337_v48 = vmul.f32 %v1285_v13, %v3658_v34 }
 0x182   : > { %v1338_v26 = vmul.f32 %v1292_v3, %v3668_v17  ;;  %v1298_v29 = vrot.slane %v1297_v1, 1  ;;  %v1303_v12 = vrot.slane %v1302_v49, 2  ;;  %v1322_v22 = vrot.slane %v1321_v25, 4 }
 0x183   : > { %v1486_v58 = vmul.f32 %v3485_v6, %v4005_v14  ;;  %v1309_v41 = vadd.f32 %v1308_v37, %v1307_v20  ;;  %v1316_v15 = vadd.f32 %v1315_v27, %v1314_v10  ;;  %v1374_v31 = vsel %vm1360_vm0, %v1337_v48, %v1336_v36  ;;  %v4022_v27 = vld [vmem:[#allocation6_spill] sm:$0xff] }
 0x184   : > { %v1488_v16 = vmul.f32 %v3485_v6, %v4006_v42  ;;  %v1299_v39 = vadd.f32 %v1298_v29, %v1297_v1  ;;  %v1304_v63 = vadd.f32 %v1303_v12, %v1302_v49  ;;  %v1323_v24 = vadd.f32 %v1322_v22, %v1321_v25  ;;  %v4024_v29 = vld [vmem:[#allocation8_spill] sm:$0xff] }
 0x185   : > { %v1375_v51 = vsel %vm1362_vm1, %v1338_v26, %v1374_v31  ;;  %v1310_v62 = vrot.slane %v1309_v41, 2  ;;  %v1317_v40 = vrot.slane %v1316_v15, 2  ;;  %v1489_v13 = vmul.f32 %v3492_v11, %v4007_v46 }
 0x186   : > { %v1490_v14 = vmul.f32 %v3485_v6, %v4008_v56  ;;  %v1305_v52 = vrot.slane %v1304_v63, 1  ;;  %v1324_v7 = vrot.slane %v1323_v24, 2  ;;  %v1339_v32 = vmul.f32 %v1299_v39, %v3675_v19  ;;  %v4027_v39 = vld [vmem:[#allocation29_spill] sm:$0xff] }
 0x187   : > { %v1491_v53 = vmul.f32 %v3492_v11, %v4009_v21  ;;  %v1311_v5 = vadd.f32 %v1310_v62, %v1309_v41  ;;  %v1318_v44 = vadd.f32 %v1317_v40, %v1316_v15  ;;  %v1492_v3 = vmul.f32 %v3485_v6, %v4010_v30  ;;  %v4026_v15 = vld [vmem:[#allocation11_spill] sm:$0xff] }
 0x188   : > { %v1493_v20 = vmul.f32 %v3492_v11, %v3440_v57  ;;  %v1306_v10 = vadd.f32 %v1305_v52, %v1304_v63  ;;  %v1325_v1 = vadd.f32 %v1324_v7, %v1323_v24  ;;  %vm4021_vm3 = vcmask 1043459  }
 0x189   : > { %v1376_v49 = vsel %vm4021_vm3, %v1339_v32, %v1375_v51  ;;  %v1494_v25 = vmul.f32 %v3485_v6, %v4011_v23  ;;  %v1312_v36 = vrot.slane %v1311_v5, 1  ;;  %v1319_v37 = vrot.slane %v1318_v44, 1  ;;  %vm4034_vm11 = vmmov %vm4021_vm3 }
 0x18a   : > { %v4023_v48 = vrot.slane %v4022_v27, 4  ;;  %v4025_v12 = vrot.slane %v4024_v29, 4  ;;  %v1326_v41 = vrot.slane %v1325_v1, 1  ;;  %v1340_v11 = vmul.f32 %v1306_v10, %v3683_v59  ;;  %vm4051_vm2 = vmmov %vm4021_vm3 }
 0x18b   : > { %v1566_v31 = vrot.slane %v4026_v15, 4  ;;  %v1572_v63 = vadd.f32 %v1486_v58, %v4027_v39  ;;  %v1313_v24 = vadd.f32 %v1312_v36, %v1311_v5  ;;  %v1320_v51 = vadd.f32 %v1319_v37, %v1318_v44 }
 0x18c   : > { %v1553_v26 = vadd.f32 %v4023_v48, %v4022_v27  ;;  %v1560_v22 = vadd.f32 %v4025_v12, %v4024_v29  ;;  %v1327_v40 = vadd.f32 %v1326_v41, %v1325_v1  ;;  %vm4028_vm5 = vcmask 1044484  }
 0x18d   : > { %v1377_v52 = vsel %vm4028_vm5, %v1340_v11, %v1376_v49  ;;  %v1567_v7 = vadd.f32 %v1566_v31, %v4026_v15  ;;  %v1573_v32 = vrot.slane %v1572_v63, 4  ;;  %v1341_v27 = vmul.f32 %v1313_v24, %v3694_v2  ;;  %vm4042_vm12 = vmmov %vm4028_vm5 }
 0x18e   : > { %v1554_v6 = vrot.slane %v1553_v26, 2  ;;  %v1561_v62 = vrot.slane %v1560_v22, 2  ;;  %v1342_v48 = vmul.f32 %v1320_v51, %v3703_v55  ;;  %v1343_v12 = vmul.f32 %v1327_v40, %v3712_v8  ;;  %vm4059_vm4 = vmmov %vm4028_vm5 }
 0x18f   : > { %v1568_v23 = vrot.slane %v1567_v7, 2  ;;  %v1574_v58 = vadd.f32 %v1573_v32, %v1572_v63  ;;  %v1579_v5 = vadd.f32 %v1488_v16, %v3571_v33  ;;  %vm4029_vm6 = vcmask 1045509   ;;  %vm4067_vm5 = vmmov %vm4051_vm2 }
 0x190   : > { %v1555_v29 = vadd.f32 %v1554_v6, %v1553_v26  ;;  %v1562_v10 = vadd.f32 %v1561_v62, %v1560_v22  ;;  %v1378_v44 = vsel %vm4029_vm6, %v1341_v27, %v1377_v52  ;;  %v1586_v49 = vadd.f32 %v1490_v14, %v1489_v13  ;;  %vm4043_vm13 = vmmov %vm4029_vm6 }
 0x191   : > { %vm4030_vm7 = vcmask 1046534   ;;  %v1569_v41 = vadd.f32 %v1568_v23, %v1567_v7  ;;  %v1575_v11 = vrot.slane %v1574_v58, 2  ;;  %v1580_v15 = vrot.slane %v1579_v5, 4  ;;  %v4032_v7 = vld [vmem:[#allocation19_spill] sm:$0xff]  ;;  %vm4061_vm9 = vmmov %vm4029_vm6 }
 0x192   : > { %v1556_v1 = vrot.slane %v1555_v29, 1  ;;  %v1563_v36 = vrot.slane %v1562_v10, 1  ;;  %v1379_v37 = vsel %vm4030_vm7, %v1342_v48, %v1378_v44  ;;  %vm4031_vm8 = vcmask 1047559   ;;  %vm4046_vm14 = vmmov %vm4030_vm7 }
 0x193   : > { %v1380_v31 = vsel %vm4031_vm8, %v1343_v12, %v1379_v37  ;;  %v1587_v39 = vrot.slane %v1586_v49, 4  ;;  %v1570_v24 = vrot.slane %v1569_v41, 1  ;;  %v1576_v63 = vadd.f32 %v1575_v11, %v1574_v58  ;;  %v4033_v37 = vld [vmem:[#allocation20_spill] sm:$0xff]  ;;  %vm4047_vm15 = vmmov %vm4031_vm8 }
 0x194   : > { %v1557_v26 = vadd.f32 %v1556_v1, %v1555_v29  ;;  %v1564_v22 = vadd.f32 %v1563_v36, %v1562_v10  ;;  %2236 = vmatmul.mubr.f32.vlgmr.msra.gmra.mrb[0].mxu0 %v1380_v31  ;;  %v1581_v33 = vadd.f32 %v1580_v15, %v1579_v5  ;;  %v1593_v16 = vadd.f32 %v1492_v3, %v1491_v53  ;;  %v3762_v53 = vld [vmem:[%s2786_s30 + $0x28] sm:$0xff]  ;;  %v3770_v5 = vld [vmem:[%s2786_s30 + $0x20] sm:$0xff]  ;;  %vm4065_vm10 = vmmov %vm4030_vm7 }
 0x195   : > { %v1588_v51 = vadd.f32 %v1587_v39, %v1586_v49  ;;  %v1600_v6 = vadd.f32 %v1494_v25, %v1493_v20  ;;  %2375 = vmatpush3.bf16.msra.mxu0 %v4001_v47  ;;  %v1571_v23 = vadd.f32 %v1570_v24, %v1569_v41  ;;  %v1577_v62 = vrot.slane %v1576_v63, 1  ;;  %vm4066_vm3 = vmmov %vm4031_vm8 }
 0x196   : > { %v1615_v13 = vmul.f32 %v1557_v26, %v3641_v54  ;;  %v1616_v14 = vmul.f32 %v1564_v22, %v3658_v34  ;;  %v1582_v40 = vrot.slane %v1581_v33, 2  ;;  %v1594_v52 = vrot.slane %v1593_v16, 4  ;;  %2377 = vmatprep.subr.bf16.mxu0 %v4032_v7 }
 0x197   : > { %v1589_v32 = vrot.slane %v1588_v51, 2  ;;  %v1601_v27 = vrot.slane %v1600_v6, 4  ;;  %v1743_v3 = vmul.f32 %v3762_v53, %v2984_v28  ;;  %v1578_v20 = vadd.f32 %v1577_v62, %v1576_v63 }
 0x198   : > { %v1646_v48 = vsel %vm1360_vm0, %v1616_v14, %v1615_v13  ;;  %v1583_v25 = vadd.f32 %v1582_v40, %v1581_v33  ;;  %v1595_v29 = vadd.f32 %v1594_v52, %v1593_v16  ;;  %v1617_v47 = vmul.f32 %v1571_v23, %v3668_v17  ;;  %v4035_v16 = vld [vmem:[#allocation3_spill] sm:$0xff]  ;;  %v4037_v13 = vld [vmem:[#allocation2_spill] sm:$0xff]  ;;  %v4039_v23 = vld [vmem:[#allocation21_spill] sm:$0xff] }
 0x199   : > { %v1590_v10 = vadd.f32 %v1589_v32, %v1588_v51  ;;  %v1602_v12 = vadd.f32 %v1601_v27, %v1600_v6  ;;  %v1745_v58 = vmul.f32 %v3762_v53, %v3029_v18  ;;  %v1746_v44 = vmul.f32 %v3770_v5, %v3149_v4  ;;  %2379 = vmatpush3.bf16.msra.mxu0 %v4032_v7  ;;  %v4040_v40 = vld [vmem:[#allocation4_spill] sm:$0xff]  ;;  %v4041_v52 = vld [vmem:[#allocation9_spill] sm:$0xff] }
 0x19a   : > { %v1584_v1 = vrot.slane %v1583_v25, 1  ;;  %v1596_v36 = vrot.slane %v1595_v29, 2  ;;  %v1618_v28 = vmul.f32 %v1578_v20, %v3675_v19  ;;  %v1647_v49 = vsel %vm1362_vm1, %v1617_v47, %v1646_v48  ;;  %2381 = vmatprep.subr.bf16.mxu0 %v4033_v37 }
 0x19b   : > { %v1591_v41 = vrot.slane %v1590_v10, 1  ;;  %v1603_v11 = vrot.slane %v1602_v12, 2  ;;  %v1747_v18 = vmul.f32 %v3762_v53, %v3152_v35  ;;  %v1748_v15 = vmul.f32 %v3770_v5, %v3295_v45 }
 0x19c   : > { %v1585_v31 = vadd.f32 %v1584_v1, %v1583_v25  ;;  %v1597_v4 = vadd.f32 %v1596_v36, %v1595_v29  ;;  %v1648_v26 = vsel %vm4034_vm11, %v1618_v28, %v1647_v49  ;;  %v1749_v22 = vmul.f32 %v3762_v53, %v3298_v61  ;;  %v4044_v28 = vld [vmem:[#allocation26_spill] sm:$0xff] }
 0x19d   : > { %v1592_v39 = vadd.f32 %v1591_v41, %v1590_v10  ;;  %v1604_v24 = vadd.f32 %v1603_v11, %v1602_v12  ;;  %v1750_v63 = vmul.f32 %v3770_v5, %v3392_v43  ;;  %v1751_v33 = vmul.f32 %v3762_v53, %v3395_v9  ;;  %2383 = vmatpush3.bf16.msra.mxu0 %v4033_v37 }
 0x19e   : > { %v1598_v35 = vrot.slane %v1597_v4, 1  ;;  %v1619_v45 = vmul.f32 %v1585_v31, %v3683_v59  ;;  %v4036_v51 = vrot.slane %v4035_v16, 4  ;;  %v4038_v61 = vrot.slane %v4037_v13, 4  ;;  %2385 = vmatprep.subr.bf16.mxu0 %v4039_v23 }
 0x19f   : > { %v1605_v62 = vrot.slane %v1604_v24, 1  ;;  %v1620_v43 = vmul.f32 %v1592_v39, %v3694_v2  ;;  %v1783_v9 = vrot.slane %v4040_v40, 4  ;;  %v1789_v7 = vadd.f32 %v1743_v3, %v4041_v52  ;;  %v4045_v3 = vld [vmem:[#allocation22_spill] sm:$0xff] }
 0x1a0   : > { %v1770_v6 = vadd.f32 %v4036_v51, %v4035_v16  ;;  %v1777_v14 = vadd.f32 %v4038_v61, %v4037_v13  ;;  %v1599_v32 = vadd.f32 %v1598_v35, %v1597_v4  ;;  %v1649_v27 = vsel %vm4042_vm12, %v1619_v45, %v1648_v26 }
 0x1a1   : > { %v1606_v25 = vadd.f32 %v1605_v62, %v1604_v24  ;;  %v1650_v29 = vsel %vm4043_vm13, %v1620_v43, %v1649_v27  ;;  %v1784_v47 = vadd.f32 %v1783_v9, %v4040_v40  ;;  %v1790_v10 = vrot.slane %v1789_v7, 4  ;;  %2387 = vmatpush3.bf16.msra.mxu0 %v4039_v23  ;;  %v4048_v62 = vld [vmem:[#allocation23_spill] sm:$0xff] }
 0x1a2   : > { %v1771_v48 = vrot.slane %v1770_v6, 2  ;;  %v1778_v20 = vrot.slane %v1777_v14, 2  ;;  %v1621_v12 = vmul.f32 %v1599_v32, %v3703_v55  ;;  %v1796_v49 = vadd.f32 %v1745_v58, %v4044_v28  ;;  %2389 = vmatprep.subr.bf16.mxu0 %v4045_v3 }
 0x1a3   : > { %v1622_v37 = vmul.f32 %v1606_v25, %v3712_v8  ;;  %v1785_v41 = vrot.slane %v1784_v47, 2  ;;  %v1791_v11 = vadd.f32 %v1790_v10, %v1789_v7  ;;  %v1803_v31 = vadd.f32 %v1747_v18, %v1746_v44  ;;  %v4049_v25 = vld [vmem:[#allocation24_spill] sm:$0xff] }
 0x1a4   : > { %v1772_v1 = vadd.f32 %v1771_v48, %v1770_v6  ;;  %v1779_v36 = vadd.f32 %v1778_v20, %v1777_v14  ;;  %v1651_v4 = vsel %vm4046_vm14, %v1621_v12, %v1650_v29  ;;  %v1797_v24 = vrot.slane %v1796_v49, 4 }
 0x1a5   : > { %v1652_v35 = vsel %vm4047_vm15, %v1622_v37, %v1651_v4  ;;  %v1786_v45 = vadd.f32 %v1785_v41, %v1784_v47  ;;  %v1792_v16 = vrot.slane %v1791_v11, 2  ;;  %v1804_v51 = vrot.slane %v1803_v31, 4  ;;  %2391 = vmatpush3.bf16.msra.mxu0 %v4045_v3  ;;  %v4050_v41 = vld [vmem:[#allocation42_spill] sm:$0xff] }
 0x1a6   : > { %v1773_v26 = vrot.slane %v1772_v1, 1  ;;  %v1780_v39 = vrot.slane %v1779_v36, 1  ;;  %2271 = vmatmul.mubr.f32.vlgmr.msra.gmra.mrb[0].mxu1 %v1652_v35  ;;  %v1798_v13 = vadd.f32 %v1797_v24, %v1796_v49  ;;  %v1810_v61 = vadd.f32 %v1749_v22, %v1748_v15  ;;  %2393 = vmatprep.subr.bf16.mxu0 %v4048_v62  ;;  %v4053_v24 = vld [vmem:[#allocation39_spill] sm:$0xff] }
 0x1a7   : > { %v1787_v14 = vrot.slane %v1786_v45, 1  ;;  %v1793_v23 = vadd.f32 %v1792_v16, %v1791_v11  ;;  %v1805_v44 = vadd.f32 %v1804_v51, %v1803_v31  ;;  %v1817_v18 = vadd.f32 %v1751_v33, %v1750_v63 }
 0x1a8   : > { %v1774_v58 = vadd.f32 %v1773_v26, %v1772_v1  ;;  %v1781_v6 = vadd.f32 %v1780_v39, %v1779_v36  ;;  %v1799_v43 = vrot.slane %v1798_v13, 2  ;;  %v1811_v40 = vrot.slane %v1810_v61, 4  ;;  %v4052_v26 = vld [vmem:[#allocation35_spill] sm:$0xff] }
 0x1a9   : > { %v1788_v7 = vadd.f32 %v1787_v14, %v1786_v45  ;;  %v1794_v32 = vrot.slane %v1793_v23, 1  ;;  %v1806_v27 = vrot.slane %v1805_v44, 2  ;;  %v1818_v48 = vrot.slane %v1817_v18, 4  ;;  %2395 = vmatpush3.bf16.msra.mxu0 %v4048_v62  ;;  %v4054_v45 = vld [vmem:[#allocation13_spill] sm:$0xff] }
 0x1aa   : > { %v1880_v9 = vmul.f32 %v1774_v58, %v3310_v0  ;;  %v1881_v52 = vmul.f32 %v1781_v6, %v3356_v50  ;;  %v1800_v20 = vadd.f32 %v1799_v43, %v1798_v13  ;;  %v1812_v15 = vadd.f32 %v1811_v40, %v1810_v61  ;;  %2397 = vmatprep.subr.bf16.mxu0 %v4049_v25  ;;  %v4057_v13 = vld [vmem:[#allocation12_spill] sm:$0xff] }
 0x1ab   : > { %v1761_v63 = vmul.f32 %v3762_v53, %v4006_v42  ;;  %v1795_v33 = vadd.f32 %v1794_v32, %v1793_v23  ;;  %v1807_v29 = vadd.f32 %v1806_v27, %v1805_v44  ;;  %v1819_v0 = vadd.f32 %v1818_v48, %v1817_v18  ;;  %v4060_v44 = vld [vmem:[#allocation17_spill] sm:$0xff]  ;;  %v4063_v27 = vld [vmem:[#allocation27_spill] sm:$0xff] }
 0x1ac   : > { %v1912_v22 = vsel %vm1360_vm0, %v1881_v52, %v1880_v9  ;;  %v1882_v50 = vmul.f32 %v1788_v7, %v3363_v38  ;;  %v1801_v47 = vrot.slane %v1800_v20, 1  ;;  %v1813_v10 = vrot.slane %v1812_v15, 2  ;;  %v4062_v9 = vld [vmem:[#allocation40_spill] sm:$0xff] }
 0x1ad   : > { %v1762_v12 = vmul.f32 %v3770_v5, %v4007_v46  ;;  %v1763_v1 = vmul.f32 %v3762_v53, %v4008_v56  ;;  %v1808_v36 = vrot.slane %v1807_v29, 1  ;;  %v1820_v28 = vrot.slane %v1819_v0, 2  ;;  %2399 = vmatpush3.bf16.msra.mxu0 %v4049_v25 }
 0x1ae   : > { %v1883_v49 = vmul.f32 %v1795_v33, %v3378_v60  ;;  %v1913_v3 = vsel %vm1362_vm1, %v1882_v50, %v1912_v22  ;;  %v1802_v42 = vadd.f32 %v1801_v47, %v1800_v20  ;;  %v1814_v37 = vadd.f32 %v1813_v10, %v1812_v15  ;;  %2401 = vmatprep.subr.bf16.mxu0 %v4050_v41  ;;  %v4064_v20 = vld [vmem:[#allocation41_spill] sm:$0xff] }
 0x1af   : > { %v1764_v38 = vmul.f32 %v3770_v5, %v4009_v21  ;;  %v1765_v46 = vmul.f32 %v3762_v53, %v4010_v30  ;;  %v1809_v11 = vadd.f32 %v1808_v36, %v1807_v29  ;;  %v1821_v56 = vadd.f32 %v1820_v28, %v1819_v0  ;;  %v4055_v21 = vld [vmem:[#allocation38_spill] sm:$0xff]  ;;  %v4056_v30 = vld [vmem:[#allocation16_spill] sm:$0xff] }
 0x1b0   : > { %v1914_v31 = vsel %vm4051_vm2, %v1883_v49, %v1913_v3  ;;  %v1766_v60 = vmul.f32 %v3770_v5, %v3440_v57  ;;  %v1815_v4 = vrot.slane %v1814_v37, 1  ;;  %v1884_v39 = vmul.f32 %v1802_v42, %v4052_v26 }
 0x1b1   : > { %v1767_v35 = vmul.f32 %v3762_v53, %v4053_v24  ;;  %v1827_v16 = vrot.slane %v4054_v45, 2  ;;  %v1822_v51 = vrot.slane %v1821_v56, 1  ;;  %v1885_v58 = vmul.f32 %v1809_v11, %v4055_v21  ;;  %2403 = vmatpush3.bf16.msra.mxu0 %v4050_v41 }
 0x1b2   : > { %v1834_v6 = vrot.slane %v4056_v30, 2  ;;  %v4058_v61 = vrot.slane %v4057_v13, 4  ;;  %v1816_v57 = vadd.f32 %v1815_v4, %v1814_v37  ;;  %v1915_v5 = vsel %vm4059_vm4, %v1884_v39, %v1914_v31 }
 0x1b3   : > { %v1828_v23 = vadd.f32 %v1827_v16, %v4054_v45  ;;  %v1846_v53 = vrot.slane %v4060_v44, 4  ;;  %v1823_v18 = vadd.f32 %v1822_v51, %v1821_v56  ;;  %v1916_v62 = vsel %vm4061_vm9, %v1885_v58, %v1915_v5 }
 0x1b4   : > { %v1840_v14 = vadd.f32 %v4058_v61, %v4057_v13  ;;  %v1835_v43 = vadd.f32 %v1834_v6, %v4056_v30  ;;  %v1886_v52 = vmul.f32 %v1816_v57, %v4062_v9  ;;  %v1852_v48 = vadd.f32 %v1761_v63, %v4063_v27 }
 0x1b5   : > { %v1829_v7 = vrot.slane %v1828_v23, 1  ;;  %v1847_v32 = vadd.f32 %v1846_v53, %v4060_v44  ;;  %v1887_v15 = vmul.f32 %v1823_v18, %v4064_v20  ;;  %v1859_v33 = vadd.f32 %v1763_v1, %v1762_v12 }
 0x1b6   : > { %v1841_v40 = vrot.slane %v1840_v14, 2  ;;  %v1836_v22 = vrot.slane %v1835_v43, 1  ;;  %v1917_v29 = vsel %vm4065_vm10, %v1886_v52, %v1916_v62  ;;  %v1853_v47 = vrot.slane %v1852_v48, 4 }
 0x1b7   : > { %v1830_v0 = vadd.f32 %v1829_v7, %v1828_v23  ;;  %v1848_v50 = vrot.slane %v1847_v32, 2  ;;  %v1918_v10 = vsel %vm4066_vm3, %v1887_v15, %v1917_v29  ;;  %v1860_v49 = vrot.slane %v1859_v33, 4 }
 0x1b8   : > { %v1842_v25 = vadd.f32 %v1841_v40, %v1840_v14  ;;  %v1837_v36 = vadd.f32 %v1836_v22, %v1835_v43  ;;  %2305 = vmatprep.mubr.f32.mxu0 %v1918_v10  ;;  %v1854_v42 = vadd.f32 %v1853_v47, %v1852_v48  ;;  %v1866_v37 = vadd.f32 %v1765_v46, %v1764_v38 }
 0x1b9   : > { %v1849_v3 = vadd.f32 %v1848_v50, %v1847_v32  ;;  %v1873_v63 = vadd.f32 %v1767_v35, %v1766_v60  ;;  %v1861_v11 = vadd.f32 %v1860_v49, %v1859_v33  ;;  %v1888_v56 = vmul.f32 %v1830_v0, %v3641_v54 }
 0x1ba   : > { %v1843_v28 = vrot.slane %v1842_v25, 1  ;;  %v1889_v12 = vmul.f32 %v1837_v36, %v3658_v34  ;;  %v1855_v31 = vrot.slane %v1854_v42, 2  ;;  %v1867_v4 = vrot.slane %v1866_v37, 4 }
 0x1bb   : > { %v1850_v1 = vrot.slane %v1849_v3, 1  ;;  %v1874_v26 = vrot.slane %v1873_v63, 4  ;;  %v1862_v39 = vrot.slane %v1861_v11, 2 }
 0x1bc   : > { %v1844_v41 = vadd.f32 %v1843_v28, %v1842_v25  ;;  %v1919_v45 = vsel %vm1360_vm0, %v1889_v12, %v1888_v56  ;;  %v1856_v51 = vadd.f32 %v1855_v31, %v1854_v42  ;;  %v1868_v21 = vadd.f32 %v1867_v4, %v1866_v37  ;;  %vm4068_vm0 = vmmov %vm4059_vm4 }
 0x1bd   : > { %v1851_v16 = vadd.f32 %v1850_v1, %v1849_v3  ;;  %v1875_v38 = vadd.f32 %v1874_v26, %v1873_v63  ;;  %v1863_v46 = vadd.f32 %v1862_v39, %v1861_v11 }
 0x1be   : > { %v1890_v24 = vmul.f32 %v1844_v41, %v3668_v17  ;;  %v1857_v35 = vrot.slane %v1856_v51, 1  ;;  %v1869_v54 = vrot.slane %v1868_v21, 2 }
 0x1bf   : > { %v1876_v58 = vrot.slane %v1875_v38, 2  ;;  %v1891_v34 = vmul.f32 %v1851_v16, %v3675_v19  ;;  %v1864_v30 = vrot.slane %v1863_v46, 1 }
 0x1c0   : > { %v1920_v60 = vsel %vm1362_vm1, %v1890_v24, %v1919_v45  ;;  %v1858_v6 = vadd.f32 %v1857_v35, %v1856_v51  ;;  %v1870_v13 = vadd.f32 %v1869_v54, %v1868_v21  ;;  %vm4069_vm1 = vmmov %vm4029_vm6 }
 0x1c1   : > { %v1877_v61 = vadd.f32 %v1876_v58, %v1875_v38  ;;  %v1921_v17 = vsel %vm4067_vm5, %v1891_v34, %v1920_v60  ;;  %v1865_v14 = vadd.f32 %v1864_v30, %v1863_v46  ;;  %vm4070_vm6 = vmmov %vm4030_vm7 }
 0x1c2   : > { %v1871_v57 = vrot.slane %v1870_v13, 1  ;;  %v1892_v23 = vmul.f32 %v1858_v6, %v3683_v59  ;;  %vm4071_vm7 = vmmov %vm4066_vm3 }
 0x1c3   : > { %v1878_v5 = vrot.slane %v1877_v61, 1  ;;  %v1893_v44 = vmul.f32 %v1865_v14, %v3694_v2 }
 0x1c4   : > { %v1872_v53 = vadd.f32 %v1871_v57, %v1870_v13  ;;  %v1922_v62 = vsel %vm4068_vm0, %v1892_v23, %v1921_v17 }
 0x1c5   : > { %v1879_v18 = vadd.f32 %v1878_v5, %v1877_v61  ;;  %v1923_v19 = vsel %vm4069_vm1, %v1893_v44, %v1922_v62 }
 0x1c6   : > { %v1894_v43 = vmul.f32 %v1872_v53, %v3703_v55 }
 0x1c7   : > { %v1895_v40 = vmul.f32 %v1879_v18, %v3712_v8 }
 0x1c8   : > { %v1924_v9 = vsel %vm4070_vm6, %v1894_v43, %v1923_v19 }
 0x1c9   : > { %v1925_v52 = vsel %vm4071_vm7, %v1895_v40, %v1924_v9 }
 0x1ca   : > { %2306 = vmatmul.mubr.f32.vlgmr.msra.gmra.mrb[2].mxu0 %v1925_v52 }
 0x267   : > { %v2237_v59 = vpop.f32.mrb[0].mxu0 }
 0x268   : > { %1459 = vst [vmem:[%s294_s22 + $0x8] sm:$0xff] %v2237_v59  ;;  %v1449_v2 = vpop.f32.mrb[1].mxu0 }
 0x269   : > { %1458 = vst [vmem:[%s294_s22] sm:$0xff] %v1449_v2 }
 0x279   : > { %v2272_v7 = vpop.f32.mrb[0].mxu1 }
 0x27a   : > { %2140 = vst [vmem:[%s294_s22 + $0x18] sm:$0xff] %v2272_v7  ;;  %v1721_v32 = vpop.f32.mrb[1].mxu1 }
 0x27b   : > { %2139 = vst [vmem:[%s294_s22 + $0x10] sm:$0xff] %v1721_v32 }
 0x29d   : > { %v2307_v55 = vpop.f32.mrb[2].mxu0 }
 0x29e   : > { %2144 = vst [vmem:[%s294_s22 + $0x28] sm:$0xff] %v2307_v55  ;;  %v1994_v8 = vpop.f32.mrb[3].mxu0 }
 0x29f   : > { %2143 = vst [vmem:[%s294_s22 + $0x20] sm:$0xff] %v1994_v8 }
 0x2a0 PF: > { %s14_s17 = sadd.s32 1, %s2586_s17   ;;  %s4072_s15 = smov %s2582_s16 }
 0x2a1   : > { %p11_p5 = scmp.ge.s32.totalorder %s14_s17, 4   ;;  %s4073_s16 = smov %s4075_s18 }
 0x2a3   :  { %13 = sbr.rel (!%p11_p5) target bundleno = 2 (0x2), region = 76 }

</bundles_post_ra>
